<compile_context>
chip_gen: v7x
topology: tpu7x:2x2x1
jax: 0.10.0
libtpu: 0.0.40
codegen_flags: <defaults>
</compile_context>

<pallas_src>
import functools
import math
from dataclasses import dataclass

import jax
import jax.numpy as jnp
from jax import lax
from jax.experimental import pallas as pl
from jax.experimental.pallas import tpu as pltpu

LANE = 128


def _round_up(x, m):
    return (x + m - 1) // m * m


# ---------------------------------------------------------------------------
# In-kernel helpers (all run on VMEM-resident values, f32 VPU/EUP math)
# ---------------------------------------------------------------------------

def _layernorm(x, g, b, c):
    # x: (rows, Cp) f32; real lanes are [0, c).  Mask BEFORE the mean sum so
    # correctness does not depend on pad lanes being exactly zero upstream.
    mask = lax.broadcasted_iota(jnp.int32, x.shape, 1) < c
    xm = jnp.where(mask, x, 0.0)
    mean = jnp.sum(xm, axis=-1, keepdims=True) * (1.0 / c)
    xc = jnp.where(mask, x - mean, 0.0)
    var = jnp.sum(xc * xc, axis=-1, keepdims=True) * (1.0 / c)
    # PyTorch LayerNorm default eps = 1e-5.
    return xc * lax.rsqrt(var + 1e-5) * g + b


def _gelu_tanh(y):
    # nn.GELU(approximate='tanh'), f32 on VPU/EUP.
    c = jnp.float32(math.sqrt(2.0 / math.pi))
    return 0.5 * y * (1.0 + jnp.tanh(c * (y + 0.044715 * y * y * y)))


def _mm(a_f32, w_bf16, bias_f32=None):
    # bf16 MXU operands, f32 accumulation; bias added in f32.
    out = jnp.dot(a_f32.astype(jnp.bfloat16), w_bf16.astype(jnp.bfloat16),
                  preferred_element_type=jnp.float32)
    if bias_f32 is not None:
        out = out + bias_f32
    return out


# ---------------------------------------------------------------------------
# The single fused kernel: embeddings -> L transformer blocks -> LN_f -> lm_head
# ---------------------------------------------------------------------------

def _gpt_kernel(idx_ref, wte_ref, wpe_ref,
                ln1g, ln1b, attnw, attnb, projw, projb,
                ln2g, ln2b, fcw, fcb, mpw, mpb,
                lnfg, lnfb, lmw, o_ref,
                *, C, H, HD, T, BB, L, Cp):
    ROWS = BB * T
    Vp = wte_ref.shape[0]

    # ---- fused token embedding (one-hot gather on the MXU) + positional add
    idx_i = idx_ref[...]                                           # (ROWS, 1) i32
    vocab_iota = lax.broadcasted_iota(jnp.int32, (ROWS, Vp), 1)
    onehot = jnp.where(vocab_iota == idx_i, 1.0, 0.0).astype(jnp.bfloat16)
    tok = jnp.dot(onehot, wte_ref[...], preferred_element_type=jnp.float32)
    pos = wpe_ref[...].astype(jnp.float32)                         # (T, Cp)
    pos_slab = pos if BB == 1 else jnp.concatenate([pos] * BB, axis=0)
    x = tok + pos_slab                                             # (ROWS, Cp) f32

    # ---- masks hoisted out of the layer loop
    qi = lax.broadcasted_iota(jnp.int32, (T, T), 0)
    ki = lax.broadcasted_iota(jnp.int32, (T, T), 1)
    causal = ki <= qi
    lane = lax.broadcasted_iota(jnp.int32, (T, Cp), 1)
    hmask = [(lane >= h * HD) & (lane < (h + 1) * HD) for h in range(H)]
    scale = jnp.float32(1.0 / math.sqrt(HD))

    # ---- static loop over all transformer blocks (weights indexed by layer)
    for l in range(L):
        # causal self-attention
        h1 = _layernorm(x, ln1g[l], ln1b[l], C)
        qkv = _mm(h1, attnw[l], attnb[l])                          # (ROWS, 3*Cp)
        outs = []
        for b in range(BB):                                        # static, tiny
            r0 = b * T
            q = qkv[r0:r0 + T, 0:Cp]
            k = qkv[r0:r0 + T, Cp:2 * Cp]
            v = qkv[r0:r0 + T, 2 * Cp:3 * Cp]
            yb = jnp.zeros((T, Cp), jnp.float32)
            for h in range(H):                                     # static, tiny
                # Lane-mask q to head h: contraction over all Cp lanes then
                # only picks up head h's slice of k (pad lanes are zero).
                qh = jnp.where(hmask[h], q, 0.0)
                s = lax.dot_general(
                    qh.astype(jnp.bfloat16), k.astype(jnp.bfloat16),
                    (((1,), (1,)), ((), ())),
                    preferred_element_type=jnp.float32) * scale
                s = jnp.where(causal, s, jnp.float32(-1e30))
                s = s - jnp.max(s, axis=-1, keepdims=True)
                p = jnp.exp(s)
                # approx reciprocal (EUP): ~1e-3 rel. error, fine for inference.
                p = p * pl.reciprocal(jnp.sum(p, axis=-1, keepdims=True),
                                      approx=True)
                vh = jnp.where(hmask[h], v, 0.0)
                yb = yb + jnp.dot(p.astype(jnp.bfloat16),
                                  vh.astype(jnp.bfloat16),
                                  preferred_element_type=jnp.float32)
            outs.append(yb)
        y = outs[0] if BB == 1 else jnp.concatenate(outs, axis=0)  # (ROWS, Cp)
        x = x + _mm(y, projw[l], projb[l])

        # MLP
        h2 = _layernorm(x, ln2g[l], ln2b[l], C)
        ff = _gelu_tanh(_mm(h2, fcw[l], fcb[l]))
        x = x + _mm(ff, mpw[l], mpb[l])

    # ---- final layernorm + tied lm_head (no bias)
    xf = _layernorm(x, lnfg[...], lnfb[...], C)
    o_ref[...] = jnp.dot(xf.astype(jnp.bfloat16), lmw[...],
                         preferred_element_type=jnp.float32).astype(o_ref.dtype)


# ---------------------------------------------------------------------------
# Config / params (torch-equivalent init), one-time padded/bf16 prep
# ---------------------------------------------------------------------------

@dataclass
class GPTConfig:
    block_size: int = 16
    vocab_size: int = 128
    n_layer: int = 2
    n_head: int = 2
    n_embd: int = 32


def padded_dims(cfg):
    C, V = cfg.n_embd, cfg.vocab_size
    H = cfg.n_head
    HD = C // H
    return dict(C=C, V=V, H=H, HD=HD,
                Cp=_round_up(C, LANE), Fp=_round_up(4 * C, LANE),
                Vp=_round_up(V, LANE))


def init_params(key, cfg):
    std = 0.02
    proj_std = 0.02 * (2 * cfg.n_layer) ** (-0.5)  # NANOGPT_SCALE_INIT
    C, V, P = cfg.n_embd, cfg.vocab_size, cfg.block_size

    def normal(k, shape, s):
        return s * jax.random.normal(k, shape, dtype=jnp.float32)

    keys = jax.random.split(key, 2 + cfg.n_layer)
    params = {
        "wte": normal(keys[0], (V, C), std),   # tied with lm_head
        "wpe": normal(keys[1], (P, C), std),
        "ln_f_g": jnp.ones((C,), jnp.float32),
        "ln_f_b": jnp.zeros((C,), jnp.float32),
        "blocks": [],
    }
    for l in range(cfg.n_layer):
        bk = jax.random.split(keys[2 + l], 4)
        params["blocks"].append({
            "ln1_g": jnp.ones((C,), jnp.float32),
            "ln1_b": jnp.zeros((C,), jnp.float32),
            "attn_w": normal(bk[0], (C, 3 * C), std),
            "attn_b": jnp.zeros((3 * C,), jnp.float32),
            "proj_w": normal(bk[1], (C, C), proj_std),
            "proj_b": jnp.zeros((C,), jnp.float32),
            "ln2_g": jnp.ones((C,), jnp.float32),
            "ln2_b": jnp.zeros((C,), jnp.float32),
            "fc_w": normal(bk[2], (C, 4 * C), std),
            "fc_b": jnp.zeros((4 * C,), jnp.float32),
            "mproj_w": normal(bk[3], (4 * C, C), proj_std),
            "mproj_b": jnp.zeros((C,), jnp.float32),
        })
    return params


def _pad2(a, rows, cols, dtype=jnp.float32):
    out = jnp.zeros((rows, cols), dtype)
    return out.at[:a.shape[0], :a.shape[1]].set(a.astype(dtype))


def prepare_padded_params(params, cfg):
    """One-time host-side prep: lane-dense (128-multiple) padding in the
    natural packed-head layout, bf16 weight casts, per-layer stacking along a
    leading axis, and the hoisted tied lm_head transpose."""
    d = padded_dims(cfg)
    C = d["C"]
    Cp, Fp, Vp = d["Cp"], d["Fp"], d["Vp"]
    P = cfg.block_size

    wte_p = _pad2(params["wte"], Vp, Cp)                     # (Vp, Cp) f32
    out = {
        "wte": wte_p.astype(jnp.bfloat16),                   # embedding gather
        "wpe": _pad2(params["wpe"], P, Cp),                  # (P, Cp) f32
        "ln_f_g": _pad2(params["ln_f_g"][None, :], 1, Cp),
        "ln_f_b": _pad2(params["ln_f_b"][None, :], 1, Cp),
        "lm_head_wT": wte_p.T.astype(jnp.bfloat16),          # (Cp, Vp), tied
    }

    def pad_attn_w(bp):
        # q / k / v each get one Cp-wide lane stripe; heads stay packed in the
        # first C lanes of their stripe (natural PyTorch layout).
        w = jnp.zeros((Cp, 3 * Cp), jnp.float32)
        for part in range(3):
            w = w.at[:C, part * Cp:part * Cp + C].set(
                bp["attn_w"][:, part * C:(part + 1) * C])
        return w.astype(jnp.bfloat16)

    def pad_attn_b(bp):
        b = jnp.zeros((1, 3 * Cp), jnp.float32)
        for part in range(3):
            b = b.at[0, part * Cp:part * Cp + C].set(
                bp["attn_b"][part * C:(part + 1) * C])
        return b

    def stack(fn):
        return jnp.stack([fn(bp) for bp in params["blocks"]], axis=0)

    out["ln1_g"] = stack(lambda bp: _pad2(bp["ln1_g"][None, :], 1, Cp))
    out["ln1_b"] = stack(lambda bp: _pad2(bp["ln1_b"][None, :], 1, Cp))
    out["attn_w"] = stack(pad_attn_w)
    out["attn_b"] = stack(pad_attn_b)
    out["proj_w"] = stack(lambda bp: _pad2(bp["proj_w"], Cp, Cp, jnp.bfloat16))
    out["proj_b"] = stack(lambda bp: _pad2(bp["proj_b"][None, :], 1, Cp))
    out["ln2_g"] = stack(lambda bp: _pad2(bp["ln2_g"][None, :], 1, Cp))
    out["ln2_b"] = stack(lambda bp: _pad2(bp["ln2_b"][None, :], 1, Cp))
    out["fc_w"] = stack(lambda bp: _pad2(bp["fc_w"], Cp, Fp, jnp.bfloat16))
    out["fc_b"] = stack(lambda bp: _pad2(bp["fc_b"][None, :], 1, Fp))
    out["mproj_w"] = stack(lambda bp: _pad2(bp["mproj_w"], Fp, Cp, jnp.bfloat16))
    out["mproj_b"] = stack(lambda bp: _pad2(bp["mproj_b"][None, :], 1, Cp))
    return out


# ---------------------------------------------------------------------------
# Forward pass (inference; loss branch of the torch module not implemented)
# ---------------------------------------------------------------------------

def gpt_forward(padded, idx, cfg, *, grid_parallel=2):
    """grid_parallel=2 keeps one grid step per TensorCore on v7x megacore;
    set grid_parallel=1 on v5e/v6e to fold the whole batch into one step."""
    B, T = idx.shape
    assert T <= cfg.block_size
    assert T % 8 == 0  # TODO(synk): generic T needs sublane-padded row blocks
    d = padded_dims(cfg)
    C, V, H, HD = d["C"], d["V"], d["H"], d["HD"]
    Cp, Fp, Vp = d["Cp"], d["Fp"], d["Vp"]
    L = cfg.n_layer
    P = cfg.block_size

    G = grid_parallel if (grid_parallel > 0 and B % grid_parallel == 0) else 1
    BB = B // G
    ROWS = BB * T

    kernel = functools.partial(_gpt_kernel, C=C, H=H, HD=HD, T=T, BB=BB,
                               L=L, Cp=Cp)

    def rep(shape):
        nd = len(shape)
        return pl.BlockSpec(shape, lambda i, _nd=nd: (0,) * _nd)

    idx2 = idx.reshape(B * T, 1).astype(jnp.int32)

    logits_p = pl.pallas_call(
        kernel,
        out_shape=jax.ShapeDtypeStruct((B * T, Vp), jnp.float32),
        grid=(G,),
        in_specs=[
            pl.BlockSpec((ROWS, 1), lambda i: (i, 0)),         # idx
            rep((Vp, Cp)),                                      # wte (bf16)
            pl.BlockSpec((T, Cp), lambda i: (0, 0)),            # wpe[:T]
            rep((L, 1, Cp)), rep((L, 1, Cp)),                   # ln1 g, b
            rep((L, Cp, 3 * Cp)), rep((L, 1, 3 * Cp)),          # qkv w, b
            rep((L, Cp, Cp)), rep((L, 1, Cp)),                  # attn proj
            rep((L, 1, Cp)), rep((L, 1, Cp)),                   # ln2 g, b
            rep((L, Cp, Fp)), rep((L, 1, Fp)),                  # mlp fc
            rep((L, Fp, Cp)), rep((L, 1, Cp)),                  # mlp proj
            rep((1, Cp)), rep((1, Cp)),                         # ln_f g, b
            rep((Cp, Vp)),                                      # tied lm_head
        ],
        out_specs=pl.BlockSpec((ROWS, Vp), lambda i: (i, 0)),
        compiler_params=pltpu.CompilerParams(
            dimension_semantics=("parallel",)),
    )(idx2, padded["wte"], padded["wpe"],
      padded["ln1_g"], padded["ln1_b"], padded["attn_w"], padded["attn_b"],
      padded["proj_w"], padded["proj_b"], padded["ln2_g"], padded["ln2_b"],
      padded["fc_w"], padded["fc_b"], padded["mproj_w"], padded["mproj_b"],
      padded["ln_f_g"], padded["ln_f_b"], padded["lm_head_wT"])

    logits = logits_p[:, :V] if Vp != V else logits_p
    return logits.reshape(B, T, V)


# ---------------------------------------------------------------------------
# main
# ---------------------------------------------------------------------------

if __name__ == "__main__":
    cfg = GPTConfig()
    key = jax.random.PRNGKey(0)
    pkey, ikey = jax.random.split(key)

    params = init_params(pkey, cfg)
    padded = prepare_padded_params(params, cfg)   # once, outside the forward

    B, T = 2, 8
    idx = jax.random.randint(ikey, (B, T), 0, cfg.vocab_size, dtype=jnp.int32)

    fwd = jax.jit(lambda p, i: gpt_forward(p, i, cfg))
    logits = jax.block_until_ready(fwd(padded, idx))

    assert logits.shape == (B, T, cfg.vocab_size)
    assert bool(jnp.all(jnp.isfinite(logits)))
    print("KERNEL_OK")
</pallas_src>

<mosaic_0001>
module attributes {stable_mosaic.version = 11 : i64} {
  func.func @_gpt_kernel(%arg0: i32, %arg1: memref<8x1xi32, #tpu.memory_space<vmem>>, %arg2: memref<128x128xbf16, #tpu.memory_space<vmem>>, %arg3: memref<8x128xf32, #tpu.memory_space<vmem>>, %arg4: memref<2x1x128xf32, #tpu.memory_space<vmem>>, %arg5: memref<2x1x128xf32, #tpu.memory_space<vmem>>, %arg6: memref<2x128x384xbf16, #tpu.memory_space<vmem>>, %arg7: memref<2x1x384xf32, #tpu.memory_space<vmem>>, %arg8: memref<2x128x128xbf16, #tpu.memory_space<vmem>>, %arg9: memref<2x1x128xf32, #tpu.memory_space<vmem>>, %arg10: memref<2x1x128xf32, #tpu.memory_space<vmem>>, %arg11: memref<2x1x128xf32, #tpu.memory_space<vmem>>, %arg12: memref<2x128x128xbf16, #tpu.memory_space<vmem>>, %arg13: memref<2x1x128xf32, #tpu.memory_space<vmem>>, %arg14: memref<2x128x128xbf16, #tpu.memory_space<vmem>>, %arg15: memref<2x1x128xf32, #tpu.memory_space<vmem>>, %arg16: memref<1x128xf32, #tpu.memory_space<vmem>>, %arg17: memref<1x128xf32, #tpu.memory_space<vmem>>, %arg18: memref<128x128xbf16, #tpu.memory_space<vmem>>, %arg19: memref<8x128xf32, #tpu.memory_space<vmem>>) attributes {dimension_semantics = [#tpu.dimension_semantics<parallel>], iteration_bounds = array<i64: 2>, scalar_prefetch = 0 : i64, scratch_operands = 0 : i64, tpu.core_type = #tpu.core_type<tc>, window_params = [{transform_indices = @transform_0, window_bounds = array<i64: 8, 1>}, {pipeline_mode = #tpu.pipeline_mode<synchronous>, transform_indices = @transform_1, window_bounds = array<i64: 128, 128>}, {transform_indices = @transform_2, window_bounds = array<i64: 8, 128>}, {pipeline_mode = #tpu.pipeline_mode<synchronous>, transform_indices = @transform_3, window_bounds = array<i64: 2, 1, 128>}, {pipeline_mode = #tpu.pipeline_mode<synchronous>, transform_indices = @transform_4, window_bounds = array<i64: 2, 1, 128>}, {pipeline_mode = #tpu.pipeline_mode<synchronous>, transform_indices = @transform_5, window_bounds = array<i64: 2, 128, 384>}, {pipeline_mode = #tpu.pipeline_mode<synchronous>, transform_indices = @transform_6, window_bounds = array<i64: 2, 1, 384>}, {pipeline_mode = #tpu.pipeline_mode<synchronous>, transform_indices = @transform_7, window_bounds = array<i64: 2, 128, 128>}, {pipeline_mode = #tpu.pipeline_mode<synchronous>, transform_indices = @transform_8, window_bounds = array<i64: 2, 1, 128>}, {pipeline_mode = #tpu.pipeline_mode<synchronous>, transform_indices = @transform_9, window_bounds = array<i64: 2, 1, 128>}, {pipeline_mode = #tpu.pipeline_mode<synchronous>, transform_indices = @transform_10, window_bounds = array<i64: 2, 1, 128>}, {pipeline_mode = #tpu.pipeline_mode<synchronous>, transform_indices = @transform_11, window_bounds = array<i64: 2, 128, 128>}, {pipeline_mode = #tpu.pipeline_mode<synchronous>, transform_indices = @transform_12, window_bounds = array<i64: 2, 1, 128>}, {pipeline_mode = #tpu.pipeline_mode<synchronous>, transform_indices = @transform_13, window_bounds = array<i64: 2, 128, 128>}, {pipeline_mode = #tpu.pipeline_mode<synchronous>, transform_indices = @transform_14, window_bounds = array<i64: 2, 1, 128>}, {pipeline_mode = #tpu.pipeline_mode<synchronous>, transform_indices = @transform_15, window_bounds = array<i64: 1, 128>}, {pipeline_mode = #tpu.pipeline_mode<synchronous>, transform_indices = @transform_16, window_bounds = array<i64: 1, 128>}, {pipeline_mode = #tpu.pipeline_mode<synchronous>, transform_indices = @transform_17, window_bounds = array<i64: 128, 128>}, {transform_indices = @transform_18, window_bounds = array<i64: 8, 128>}]} {
    %c0 = arith.constant 0 : index
    %c0_0 = arith.constant 0 : index
    %0 = vector.load %arg1[%c0, %c0_0] : memref<8x1xi32, #tpu.memory_space<vmem>>, vector<8x1xi32>
    %1 = tpu.iota {dimensions = array<i32: 1>} : vector<8x128xi32>
    %2 = vector.broadcast %0 : vector<8x1xi32> to vector<8x128xi32>
    %3 = arith.cmpi eq, %1, %2 : vector<8x128xi32>
    %cst = arith.constant 1.000000e+00 : f32
    %cst_1 = arith.constant 0.000000e+00 : f32
    %4 = vector.broadcast %cst : f32 to vector<8x128xf32>
    %5 = vector.broadcast %cst_1 : f32 to vector<8x128xf32>
    %6 = arith.select %3, %4, %5 : vector<8x128xi1>, vector<8x128xf32>
    %7 = arith.truncf %6 : vector<8x128xf32> to vector<8x128xbf16>
    %c0_2 = arith.constant 0 : index
    %c0_3 = arith.constant 0 : index
    %8 = vector.load %arg2[%c0_2, %c0_3] : memref<128x128xbf16, #tpu.memory_space<vmem>>, vector<128x128xbf16>
    %cst_4 = arith.constant dense<0.000000e+00> : vector<8x128xf32>
    %9 = tpu.matmul %7, %8, %cst_4 {dimension_numbers = #tpu.dot_dimension_numbers<[1], [0], [0], [1], [0, 0, 1, 1], [], []>} : vector<8x128xbf16>, vector<128x128xbf16>, vector<8x128xf32> -> vector<8x128xf32>
    %c0_5 = arith.constant 0 : index
    %c0_6 = arith.constant 0 : index
    %10 = vector.load %arg3[%c0_5, %c0_6] : memref<8x128xf32, #tpu.memory_space<vmem>>, vector<8x128xf32>
    %11 = arith.addf %9, %10 : vector<8x128xf32>
    %12 = tpu.iota {dimensions = array<i32: 0>} : vector<8x8xi32>
    %13 = tpu.iota {dimensions = array<i32: 1>} : vector<8x8xi32>
    %14 = arith.cmpi sle, %13, %12 : vector<8x8xi32>
    %15 = tpu.iota {dimensions = array<i32: 1>} : vector<8x128xi32>
    %c0_i32 = arith.constant 0 : i32
    %16 = vector.broadcast %c0_i32 : i32 to vector<8x128xi32>
    %17 = arith.cmpi sge, %15, %16 : vector<8x128xi32>
    %c16_i32 = arith.constant 16 : i32
    %18 = vector.broadcast %c16_i32 : i32 to vector<8x128xi32>
    %19 = arith.cmpi slt, %15, %18 : vector<8x128xi32>
    %20 = arith.andi %17, %19 : vector<8x128xi1>
    %c16_i32_7 = arith.constant 16 : i32
    %21 = vector.broadcast %c16_i32_7 : i32 to vector<8x128xi32>
    %22 = arith.cmpi sge, %15, %21 : vector<8x128xi32>
    %c32_i32 = arith.constant 32 : i32
    %23 = vector.broadcast %c32_i32 : i32 to vector<8x128xi32>
    %24 = arith.cmpi slt, %15, %23 : vector<8x128xi32>
    %25 = arith.andi %22, %24 : vector<8x128xi1>
    %c0_8 = arith.constant 0 : index
    %c0_9 = arith.constant 0 : index
    %c0_10 = arith.constant 0 : index
    %26 = vector.load %arg4[%c0_8, %c0_9, %c0_10] : memref<2x1x128xf32, #tpu.memory_space<vmem>>, vector<1x1x128xf32>
    %27 = vector.shape_cast %26 : vector<1x1x128xf32> to vector<1x128xf32>
    %c0_11 = arith.constant 0 : index
    %c0_12 = arith.constant 0 : index
    %c0_13 = arith.constant 0 : index
    %28 = vector.load %arg5[%c0_11, %c0_12, %c0_13] : memref<2x1x128xf32, #tpu.memory_space<vmem>>, vector<1x1x128xf32>
    %29 = vector.shape_cast %28 : vector<1x1x128xf32> to vector<1x128xf32>
    %30 = tpu.iota {dimensions = array<i32: 1>} : vector<8x128xi32>
    %c32_i32_14 = arith.constant 32 : i32
    %31 = vector.broadcast %c32_i32_14 : i32 to vector<8x128xi32>
    %32 = arith.cmpi slt, %30, %31 : vector<8x128xi32>
    %cst_15 = arith.constant 0.000000e+00 : f32
    %33 = vector.broadcast %cst_15 : f32 to vector<8x128xf32>
    %34 = arith.select %32, %11, %33 : vector<8x128xi1>, vector<8x128xf32>
    %cst_16 = arith.constant dense<0.000000e+00> : vector<8xf32>
    %35 = vector.multi_reduction <add>, %34, %cst_16 [1] : vector<8x128xf32> to vector<8xf32>
    %36 = vector.shape_cast %35 : vector<8xf32> to vector<8x1xf32>
    %cst_17 = arith.constant 3.125000e-02 : f32
    %37 = vector.broadcast %cst_17 : f32 to vector<8x1xf32>
    %38 = arith.mulf %36, %37 : vector<8x1xf32>
    %39 = vector.broadcast %38 : vector<8x1xf32> to vector<8x128xf32>
    %40 = arith.subf %11, %39 : vector<8x128xf32>
    %cst_18 = arith.constant 0.000000e+00 : f32
    %41 = vector.broadcast %cst_18 : f32 to vector<8x128xf32>
    %42 = arith.select %32, %40, %41 : vector<8x128xi1>, vector<8x128xf32>
    %43 = arith.mulf %42, %42 : vector<8x128xf32>
    %cst_19 = arith.constant dense<0.000000e+00> : vector<8xf32>
    %44 = vector.multi_reduction <add>, %43, %cst_19 [1] : vector<8x128xf32> to vector<8xf32>
    %45 = vector.shape_cast %44 : vector<8xf32> to vector<8x1xf32>
    %cst_20 = arith.constant 3.125000e-02 : f32
    %46 = vector.broadcast %cst_20 : f32 to vector<8x1xf32>
    %47 = arith.mulf %45, %46 : vector<8x1xf32>
    %cst_21 = arith.constant 9.99999974E-6 : f32
    %48 = vector.broadcast %cst_21 : f32 to vector<8x1xf32>
    %49 = arith.addf %47, %48 : vector<8x1xf32>
    %50 = math.rsqrt %49 : vector<8x1xf32>
    %51 = vector.broadcast %50 : vector<8x1xf32> to vector<8x128xf32>
    %52 = arith.mulf %42, %51 : vector<8x128xf32>
    %53 = vector.broadcast %27 : vector<1x128xf32> to vector<8x128xf32>
    %54 = arith.mulf %52, %53 : vector<8x128xf32>
    %55 = vector.broadcast %29 : vector<1x128xf32> to vector<8x128xf32>
    %56 = arith.addf %54, %55 : vector<8x128xf32>
    %c0_22 = arith.constant 0 : index
    %c0_23 = arith.constant 0 : index
    %c0_24 = arith.constant 0 : index
    %57 = vector.load %arg6[%c0_22, %c0_23, %c0_24] : memref<2x128x384xbf16, #tpu.memory_space<vmem>>, vector<1x128x384xbf16>
    %58 = vector.shape_cast %57 : vector<1x128x384xbf16> to vector<128x384xbf16>
    %c0_25 = arith.constant 0 : index
    %c0_26 = arith.constant 0 : index
    %c0_27 = arith.constant 0 : index
    %59 = vector.load %arg7[%c0_25, %c0_26, %c0_27] : memref<2x1x384xf32, #tpu.memory_space<vmem>>, vector<1x1x384xf32>
    %60 = vector.shape_cast %59 : vector<1x1x384xf32> to vector<1x384xf32>
    %61 = arith.truncf %56 : vector<8x128xf32> to vector<8x128xbf16>
    %cst_28 = arith.constant dense<0.000000e+00> : vector<8x384xf32>
    %62 = tpu.matmul %61, %58, %cst_28 {dimension_numbers = #tpu.dot_dimension_numbers<[1], [0], [0], [1], [0, 0, 1, 1], [], []>} : vector<8x128xbf16>, vector<128x384xbf16>, vector<8x384xf32> -> vector<8x384xf32>
    %63 = vector.broadcast %60 : vector<1x384xf32> to vector<8x384xf32>
    %64 = arith.addf %62, %63 : vector<8x384xf32>
    %65 = vector.extract_strided_slice %64 {offsets = [0, 0], sizes = [8, 128], strides = [1, 1]} : vector<8x384xf32> to vector<8x128xf32>
    %66 = vector.extract_strided_slice %64 {offsets = [0, 128], sizes = [8, 128], strides = [1, 1]} : vector<8x384xf32> to vector<8x128xf32>
    %67 = vector.extract_strided_slice %64 {offsets = [0, 256], sizes = [8, 128], strides = [1, 1]} : vector<8x384xf32> to vector<8x128xf32>
    %cst_29 = arith.constant 0.000000e+00 : f32
    %68 = vector.broadcast %cst_29 : f32 to vector<8x128xf32>
    %cst_30 = arith.constant 0.000000e+00 : f32
    %69 = vector.broadcast %cst_30 : f32 to vector<8x128xf32>
    %70 = arith.select %20, %65, %69 : vector<8x128xi1>, vector<8x128xf32>
    %71 = arith.truncf %70 : vector<8x128xf32> to vector<8x128xbf16>
    %72 = arith.truncf %66 : vector<8x128xf32> to vector<8x128xbf16>
    %cst_31 = arith.constant dense<0.000000e+00> : vector<8x8xf32>
    %73 = tpu.matmul %71, %72, %cst_31 {dimension_numbers = #tpu.dot_dimension_numbers<[1], [1], [0], [0], [0, 0, 1, 0], [], []>} : vector<8x128xbf16>, vector<8x128xbf16>, vector<8x8xf32> -> vector<8x8xf32>
    %cst_32 = arith.constant 2.500000e-01 : f32
    %74 = vector.broadcast %cst_32 : f32 to vector<8x8xf32>
    %75 = arith.mulf %73, %74 : vector<8x8xf32>
    %cst_33 = arith.constant -1.000000e+30 : f32
    %76 = vector.broadcast %cst_33 : f32 to vector<8x8xf32>
    %77 = arith.select %14, %75, %76 : vector<8x8xi1>, vector<8x8xf32>
    %cst_34 = arith.constant dense<0xFF800000> : vector<8xf32>
    %78 = vector.multi_reduction <maximumf>, %77, %cst_34 [1] : vector<8x8xf32> to vector<8xf32>
    %79 = vector.shape_cast %78 : vector<8xf32> to vector<8x1xf32>
    %80 = vector.broadcast %79 : vector<8x1xf32> to vector<8x8xf32>
    %81 = arith.subf %77, %80 : vector<8x8xf32>
    %82 = math.exp %81 : vector<8x8xf32>
    %cst_35 = arith.constant dense<0.000000e+00> : vector<8xf32>
    %83 = vector.multi_reduction <add>, %82, %cst_35 [1] : vector<8x8xf32> to vector<8xf32>
    %84 = vector.shape_cast %83 : vector<8xf32> to vector<8x1xf32>
    %85 = tpu.reciprocal %84 {approx = true} : vector<8x1xf32> -> vector<8x1xf32>
    %86 = vector.broadcast %85 : vector<8x1xf32> to vector<8x8xf32>
    %87 = arith.mulf %82, %86 : vector<8x8xf32>
    %cst_36 = arith.constant 0.000000e+00 : f32
    %88 = vector.broadcast %cst_36 : f32 to vector<8x128xf32>
    %89 = arith.select %20, %67, %88 : vector<8x128xi1>, vector<8x128xf32>
    %90 = arith.truncf %87 : vector<8x8xf32> to vector<8x8xbf16>
    %91 = arith.truncf %89 : vector<8x128xf32> to vector<8x128xbf16>
    %cst_37 = arith.constant dense<0.000000e+00> : vector<8x128xf32>
    %92 = tpu.matmul %90, %91, %cst_37 {dimension_numbers = #tpu.dot_dimension_numbers<[1], [0], [0], [1], [0, 0, 1, 1], [], []>} : vector<8x8xbf16>, vector<8x128xbf16>, vector<8x128xf32> -> vector<8x128xf32>
    %93 = arith.addf %68, %92 : vector<8x128xf32>
    %cst_38 = arith.constant 0.000000e+00 : f32
    %94 = vector.broadcast %cst_38 : f32 to vector<8x128xf32>
    %95 = arith.select %25, %65, %94 : vector<8x128xi1>, vector<8x128xf32>
    %96 = arith.truncf %95 : vector<8x128xf32> to vector<8x128xbf16>
    %97 = arith.truncf %66 : vector<8x128xf32> to vector<8x128xbf16>
    %cst_39 = arith.constant dense<0.000000e+00> : vector<8x8xf32>
    %98 = tpu.matmul %96, %97, %cst_39 {dimension_numbers = #tpu.dot_dimension_numbers<[1], [1], [0], [0], [0, 0, 1, 0], [], []>} : vector<8x128xbf16>, vector<8x128xbf16>, vector<8x8xf32> -> vector<8x8xf32>
    %cst_40 = arith.constant 2.500000e-01 : f32
    %99 = vector.broadcast %cst_40 : f32 to vector<8x8xf32>
    %100 = arith.mulf %98, %99 : vector<8x8xf32>
    %cst_41 = arith.constant -1.000000e+30 : f32
    %101 = vector.broadcast %cst_41 : f32 to vector<8x8xf32>
    %102 = arith.select %14, %100, %101 : vector<8x8xi1>, vector<8x8xf32>
    %cst_42 = arith.constant dense<0xFF800000> : vector<8xf32>
    %103 = vector.multi_reduction <maximumf>, %102, %cst_42 [1] : vector<8x8xf32> to vector<8xf32>
    %104 = vector.shape_cast %103 : vector<8xf32> to vector<8x1xf32>
    %105 = vector.broadcast %104 : vector<8x1xf32> to vector<8x8xf32>
    %106 = arith.subf %102, %105 : vector<8x8xf32>
    %107 = math.exp %106 : vector<8x8xf32>
    %cst_43 = arith.constant dense<0.000000e+00> : vector<8xf32>
    %108 = vector.multi_reduction <add>, %107, %cst_43 [1] : vector<8x8xf32> to vector<8xf32>
    %109 = vector.shape_cast %108 : vector<8xf32> to vector<8x1xf32>
    %110 = tpu.reciprocal %109 {approx = true} : vector<8x1xf32> -> vector<8x1xf32>
    %111 = vector.broadcast %110 : vector<8x1xf32> to vector<8x8xf32>
    %112 = arith.mulf %107, %111 : vector<8x8xf32>
    %cst_44 = arith.constant 0.000000e+00 : f32
    %113 = vector.broadcast %cst_44 : f32 to vector<8x128xf32>
    %114 = arith.select %25, %67, %113 : vector<8x128xi1>, vector<8x128xf32>
    %115 = arith.truncf %112 : vector<8x8xf32> to vector<8x8xbf16>
    %116 = arith.truncf %114 : vector<8x128xf32> to vector<8x128xbf16>
    %cst_45 = arith.constant dense<0.000000e+00> : vector<8x128xf32>
    %117 = tpu.matmul %115, %116, %cst_45 {dimension_numbers = #tpu.dot_dimension_numbers<[1], [0], [0], [1], [0, 0, 1, 1], [], []>} : vector<8x8xbf16>, vector<8x128xbf16>, vector<8x128xf32> -> vector<8x128xf32>
    %118 = arith.addf %93, %117 : vector<8x128xf32>
    %c0_46 = arith.constant 0 : index
    %c0_47 = arith.constant 0 : index
    %c0_48 = arith.constant 0 : index
    %119 = vector.load %arg8[%c0_46, %c0_47, %c0_48] : memref<2x128x128xbf16, #tpu.memory_space<vmem>>, vector<1x128x128xbf16>
    %120 = vector.shape_cast %119 : vector<1x128x128xbf16> to vector<128x128xbf16>
    %c0_49 = arith.constant 0 : index
    %c0_50 = arith.constant 0 : index
    %c0_51 = arith.constant 0 : index
    %121 = vector.load %arg9[%c0_49, %c0_50, %c0_51] : memref<2x1x128xf32, #tpu.memory_space<vmem>>, vector<1x1x128xf32>
    %122 = vector.shape_cast %121 : vector<1x1x128xf32> to vector<1x128xf32>
    %123 = arith.truncf %118 : vector<8x128xf32> to vector<8x128xbf16>
    %cst_52 = arith.constant dense<0.000000e+00> : vector<8x128xf32>
    %124 = tpu.matmul %123, %120, %cst_52 {dimension_numbers = #tpu.dot_dimension_numbers<[1], [0], [0], [1], [0, 0, 1, 1], [], []>} : vector<8x128xbf16>, vector<128x128xbf16>, vector<8x128xf32> -> vector<8x128xf32>
    %125 = vector.broadcast %122 : vector<1x128xf32> to vector<8x128xf32>
    %126 = arith.addf %124, %125 : vector<8x128xf32>
    %127 = arith.addf %11, %126 : vector<8x128xf32>
    %c0_53 = arith.constant 0 : index
    %c0_54 = arith.constant 0 : index
    %c0_55 = arith.constant 0 : index
    %128 = vector.load %arg10[%c0_53, %c0_54, %c0_55] : memref<2x1x128xf32, #tpu.memory_space<vmem>>, vector<1x1x128xf32>
    %129 = vector.shape_cast %128 : vector<1x1x128xf32> to vector<1x128xf32>
    %c0_56 = arith.constant 0 : index
    %c0_57 = arith.constant 0 : index
    %c0_58 = arith.constant 0 : index
    %130 = vector.load %arg11[%c0_56, %c0_57, %c0_58] : memref<2x1x128xf32, #tpu.memory_space<vmem>>, vector<1x1x128xf32>
    %131 = vector.shape_cast %130 : vector<1x1x128xf32> to vector<1x128xf32>
    %132 = tpu.iota {dimensions = array<i32: 1>} : vector<8x128xi32>
    %c32_i32_59 = arith.constant 32 : i32
    %133 = vector.broadcast %c32_i32_59 : i32 to vector<8x128xi32>
    %134 = arith.cmpi slt, %132, %133 : vector<8x128xi32>
    %cst_60 = arith.constant 0.000000e+00 : f32
    %135 = vector.broadcast %cst_60 : f32 to vector<8x128xf32>
    %136 = arith.select %134, %127, %135 : vector<8x128xi1>, vector<8x128xf32>
    %cst_61 = arith.constant dense<0.000000e+00> : vector<8xf32>
    %137 = vector.multi_reduction <add>, %136, %cst_61 [1] : vector<8x128xf32> to vector<8xf32>
    %138 = vector.shape_cast %137 : vector<8xf32> to vector<8x1xf32>
    %cst_62 = arith.constant 3.125000e-02 : f32
    %139 = vector.broadcast %cst_62 : f32 to vector<8x1xf32>
    %140 = arith.mulf %138, %139 : vector<8x1xf32>
    %141 = vector.broadcast %140 : vector<8x1xf32> to vector<8x128xf32>
    %142 = arith.subf %127, %141 : vector<8x128xf32>
    %cst_63 = arith.constant 0.000000e+00 : f32
    %143 = vector.broadcast %cst_63 : f32 to vector<8x128xf32>
    %144 = arith.select %134, %142, %143 : vector<8x128xi1>, vector<8x128xf32>
    %145 = arith.mulf %144, %144 : vector<8x128xf32>
    %cst_64 = arith.constant dense<0.000000e+00> : vector<8xf32>
    %146 = vector.multi_reduction <add>, %145, %cst_64 [1] : vector<8x128xf32> to vector<8xf32>
    %147 = vector.shape_cast %146 : vector<8xf32> to vector<8x1xf32>
    %cst_65 = arith.constant 3.125000e-02 : f32
    %148 = vector.broadcast %cst_65 : f32 to vector<8x1xf32>
    %149 = arith.mulf %147, %148 : vector<8x1xf32>
    %cst_66 = arith.constant 9.99999974E-6 : f32
    %150 = vector.broadcast %cst_66 : f32 to vector<8x1xf32>
    %151 = arith.addf %149, %150 : vector<8x1xf32>
    %152 = math.rsqrt %151 : vector<8x1xf32>
    %153 = vector.broadcast %152 : vector<8x1xf32> to vector<8x128xf32>
    %154 = arith.mulf %144, %153 : vector<8x128xf32>
    %155 = vector.broadcast %129 : vector<1x128xf32> to vector<8x128xf32>
    %156 = arith.mulf %154, %155 : vector<8x128xf32>
    %157 = vector.broadcast %131 : vector<1x128xf32> to vector<8x128xf32>
    %158 = arith.addf %156, %157 : vector<8x128xf32>
    %c0_67 = arith.constant 0 : index
    %c0_68 = arith.constant 0 : index
    %c0_69 = arith.constant 0 : index
    %159 = vector.load %arg12[%c0_67, %c0_68, %c0_69] : memref<2x128x128xbf16, #tpu.memory_space<vmem>>, vector<1x128x128xbf16>
    %160 = vector.shape_cast %159 : vector<1x128x128xbf16> to vector<128x128xbf16>
    %c0_70 = arith.constant 0 : index
    %c0_71 = arith.constant 0 : index
    %c0_72 = arith.constant 0 : index
    %161 = vector.load %arg13[%c0_70, %c0_71, %c0_72] : memref<2x1x128xf32, #tpu.memory_space<vmem>>, vector<1x1x128xf32>
    %162 = vector.shape_cast %161 : vector<1x1x128xf32> to vector<1x128xf32>
    %163 = arith.truncf %158 : vector<8x128xf32> to vector<8x128xbf16>
    %cst_73 = arith.constant dense<0.000000e+00> : vector<8x128xf32>
    %164 = tpu.matmul %163, %160, %cst_73 {dimension_numbers = #tpu.dot_dimension_numbers<[1], [0], [0], [1], [0, 0, 1, 1], [], []>} : vector<8x128xbf16>, vector<128x128xbf16>, vector<8x128xf32> -> vector<8x128xf32>
    %165 = vector.broadcast %162 : vector<1x128xf32> to vector<8x128xf32>
    %166 = arith.addf %164, %165 : vector<8x128xf32>
    %cst_74 = arith.constant 5.000000e-01 : f32
    %167 = vector.broadcast %cst_74 : f32 to vector<8x128xf32>
    %168 = arith.mulf %167, %166 : vector<8x128xf32>
    %cst_75 = arith.constant 4.471500e-02 : f32
    %169 = vector.broadcast %cst_75 : f32 to vector<8x128xf32>
    %170 = arith.mulf %169, %166 : vector<8x128xf32>
    %171 = arith.mulf %170, %166 : vector<8x128xf32>
    %172 = arith.mulf %171, %166 : vector<8x128xf32>
    %173 = arith.addf %166, %172 : vector<8x128xf32>
    %cst_76 = arith.constant 0.797884583 : f32
    %174 = vector.broadcast %cst_76 : f32 to vector<8x128xf32>
    %175 = arith.mulf %174, %173 : vector<8x128xf32>
    %176 = math.tanh %175 : vector<8x128xf32>
    %cst_77 = arith.constant 1.000000e+00 : f32
    %177 = vector.broadcast %cst_77 : f32 to vector<8x128xf32>
    %178 = arith.addf %177, %176 : vector<8x128xf32>
    %179 = arith.mulf %168, %178 : vector<8x128xf32>
    %c0_78 = arith.constant 0 : index
    %c0_79 = arith.constant 0 : index
    %c0_80 = arith.constant 0 : index
    %180 = vector.load %arg14[%c0_78, %c0_79, %c0_80] : memref<2x128x128xbf16, #tpu.memory_space<vmem>>, vector<1x128x128xbf16>
    %181 = vector.shape_cast %180 : vector<1x128x128xbf16> to vector<128x128xbf16>
    %c0_81 = arith.constant 0 : index
    %c0_82 = arith.constant 0 : index
    %c0_83 = arith.constant 0 : index
    %182 = vector.load %arg15[%c0_81, %c0_82, %c0_83] : memref<2x1x128xf32, #tpu.memory_space<vmem>>, vector<1x1x128xf32>
    %183 = vector.shape_cast %182 : vector<1x1x128xf32> to vector<1x128xf32>
    %184 = arith.truncf %179 : vector<8x128xf32> to vector<8x128xbf16>
    %cst_84 = arith.constant dense<0.000000e+00> : vector<8x128xf32>
    %185 = tpu.matmul %184, %181, %cst_84 {dimension_numbers = #tpu.dot_dimension_numbers<[1], [0], [0], [1], [0, 0, 1, 1], [], []>} : vector<8x128xbf16>, vector<128x128xbf16>, vector<8x128xf32> -> vector<8x128xf32>
    %186 = vector.broadcast %183 : vector<1x128xf32> to vector<8x128xf32>
    %187 = arith.addf %185, %186 : vector<8x128xf32>
    %188 = arith.addf %127, %187 : vector<8x128xf32>
    %c1 = arith.constant 1 : index
    %c0_85 = arith.constant 0 : index
    %c0_86 = arith.constant 0 : index
    %189 = vector.load %arg4[%c1, %c0_85, %c0_86] : memref<2x1x128xf32, #tpu.memory_space<vmem>>, vector<1x1x128xf32>
    %190 = vector.shape_cast %189 : vector<1x1x128xf32> to vector<1x128xf32>
    %c1_87 = arith.constant 1 : index
    %c0_88 = arith.constant 0 : index
    %c0_89 = arith.constant 0 : index
    %191 = vector.load %arg5[%c1_87, %c0_88, %c0_89] : memref<2x1x128xf32, #tpu.memory_space<vmem>>, vector<1x1x128xf32>
    %192 = vector.shape_cast %191 : vector<1x1x128xf32> to vector<1x128xf32>
    %193 = tpu.iota {dimensions = array<i32: 1>} : vector<8x128xi32>
    %c32_i32_90 = arith.constant 32 : i32
    %194 = vector.broadcast %c32_i32_90 : i32 to vector<8x128xi32>
    %195 = arith.cmpi slt, %193, %194 : vector<8x128xi32>
    %cst_91 = arith.constant 0.000000e+00 : f32
    %196 = vector.broadcast %cst_91 : f32 to vector<8x128xf32>
    %197 = arith.select %195, %188, %196 : vector<8x128xi1>, vector<8x128xf32>
    %cst_92 = arith.constant dense<0.000000e+00> : vector<8xf32>
    %198 = vector.multi_reduction <add>, %197, %cst_92 [1] : vector<8x128xf32> to vector<8xf32>
    %199 = vector.shape_cast %198 : vector<8xf32> to vector<8x1xf32>
    %cst_93 = arith.constant 3.125000e-02 : f32
    %200 = vector.broadcast %cst_93 : f32 to vector<8x1xf32>
    %201 = arith.mulf %199, %200 : vector<8x1xf32>
    %202 = vector.broadcast %201 : vector<8x1xf32> to vector<8x128xf32>
    %203 = arith.subf %188, %202 : vector<8x128xf32>
    %cst_94 = arith.constant 0.000000e+00 : f32
    %204 = vector.broadcast %cst_94 : f32 to vector<8x128xf32>
    %205 = arith.select %195, %203, %204 : vector<8x128xi1>, vector<8x128xf32>
    %206 = arith.mulf %205, %205 : vector<8x128xf32>
    %cst_95 = arith.constant dense<0.000000e+00> : vector<8xf32>
    %207 = vector.multi_reduction <add>, %206, %cst_95 [1] : vector<8x128xf32> to vector<8xf32>
    %208 = vector.shape_cast %207 : vector<8xf32> to vector<8x1xf32>
    %cst_96 = arith.constant 3.125000e-02 : f32
    %209 = vector.broadcast %cst_96 : f32 to vector<8x1xf32>
    %210 = arith.mulf %208, %209 : vector<8x1xf32>
    %cst_97 = arith.constant 9.99999974E-6 : f32
    %211 = vector.broadcast %cst_97 : f32 to vector<8x1xf32>
    %212 = arith.addf %210, %211 : vector<8x1xf32>
    %213 = math.rsqrt %212 : vector<8x1xf32>
    %214 = vector.broadcast %213 : vector<8x1xf32> to vector<8x128xf32>
    %215 = arith.mulf %205, %214 : vector<8x128xf32>
    %216 = vector.broadcast %190 : vector<1x128xf32> to vector<8x128xf32>
    %217 = arith.mulf %215, %216 : vector<8x128xf32>
    %218 = vector.broadcast %192 : vector<1x128xf32> to vector<8x128xf32>
    %219 = arith.addf %217, %218 : vector<8x128xf32>
    %c1_98 = arith.constant 1 : index
    %c0_99 = arith.constant 0 : index
    %c0_100 = arith.constant 0 : index
    %220 = vector.load %arg6[%c1_98, %c0_99, %c0_100] : memref<2x128x384xbf16, #tpu.memory_space<vmem>>, vector<1x128x384xbf16>
    %221 = vector.shape_cast %220 : vector<1x128x384xbf16> to vector<128x384xbf16>
    %c1_101 = arith.constant 1 : index
    %c0_102 = arith.constant 0 : index
    %c0_103 = arith.constant 0 : index
    %222 = vector.load %arg7[%c1_101, %c0_102, %c0_103] : memref<2x1x384xf32, #tpu.memory_space<vmem>>, vector<1x1x384xf32>
    %223 = vector.shape_cast %222 : vector<1x1x384xf32> to vector<1x384xf32>
    %224 = arith.truncf %219 : vector<8x128xf32> to vector<8x128xbf16>
    %cst_104 = arith.constant dense<0.000000e+00> : vector<8x384xf32>
    %225 = tpu.matmul %224, %221, %cst_104 {dimension_numbers = #tpu.dot_dimension_numbers<[1], [0], [0], [1], [0, 0, 1, 1], [], []>} : vector<8x128xbf16>, vector<128x384xbf16>, vector<8x384xf32> -> vector<8x384xf32>
    %226 = vector.broadcast %223 : vector<1x384xf32> to vector<8x384xf32>
    %227 = arith.addf %225, %226 : vector<8x384xf32>
    %228 = vector.extract_strided_slice %227 {offsets = [0, 0], sizes = [8, 128], strides = [1, 1]} : vector<8x384xf32> to vector<8x128xf32>
    %229 = vector.extract_strided_slice %227 {offsets = [0, 128], sizes = [8, 128], strides = [1, 1]} : vector<8x384xf32> to vector<8x128xf32>
    %230 = vector.extract_strided_slice %227 {offsets = [0, 256], sizes = [8, 128], strides = [1, 1]} : vector<8x384xf32> to vector<8x128xf32>
    %cst_105 = arith.constant 0.000000e+00 : f32
    %231 = vector.broadcast %cst_105 : f32 to vector<8x128xf32>
    %cst_106 = arith.constant 0.000000e+00 : f32
    %232 = vector.broadcast %cst_106 : f32 to vector<8x128xf32>
    %233 = arith.select %20, %228, %232 : vector<8x128xi1>, vector<8x128xf32>
    %234 = arith.truncf %233 : vector<8x128xf32> to vector<8x128xbf16>
    %235 = arith.truncf %229 : vector<8x128xf32> to vector<8x128xbf16>
    %cst_107 = arith.constant dense<0.000000e+00> : vector<8x8xf32>
    %236 = tpu.matmul %234, %235, %cst_107 {dimension_numbers = #tpu.dot_dimension_numbers<[1], [1], [0], [0], [0, 0, 1, 0], [], []>} : vector<8x128xbf16>, vector<8x128xbf16>, vector<8x8xf32> -> vector<8x8xf32>
    %cst_108 = arith.constant 2.500000e-01 : f32
    %237 = vector.broadcast %cst_108 : f32 to vector<8x8xf32>
    %238 = arith.mulf %236, %237 : vector<8x8xf32>
    %cst_109 = arith.constant -1.000000e+30 : f32
    %239 = vector.broadcast %cst_109 : f32 to vector<8x8xf32>
    %240 = arith.select %14, %238, %239 : vector<8x8xi1>, vector<8x8xf32>
    %cst_110 = arith.constant dense<0xFF800000> : vector<8xf32>
    %241 = vector.multi_reduction <maximumf>, %240, %cst_110 [1] : vector<8x8xf32> to vector<8xf32>
    %242 = vector.shape_cast %241 : vector<8xf32> to vector<8x1xf32>
    %243 = vector.broadcast %242 : vector<8x1xf32> to vector<8x8xf32>
    %244 = arith.subf %240, %243 : vector<8x8xf32>
    %245 = math.exp %244 : vector<8x8xf32>
    %cst_111 = arith.constant dense<0.000000e+00> : vector<8xf32>
    %246 = vector.multi_reduction <add>, %245, %cst_111 [1] : vector<8x8xf32> to vector<8xf32>
    %247 = vector.shape_cast %246 : vector<8xf32> to vector<8x1xf32>
    %248 = tpu.reciprocal %247 {approx = true} : vector<8x1xf32> -> vector<8x1xf32>
    %249 = vector.broadcast %248 : vector<8x1xf32> to vector<8x8xf32>
    %250 = arith.mulf %245, %249 : vector<8x8xf32>
    %cst_112 = arith.constant 0.000000e+00 : f32
    %251 = vector.broadcast %cst_112 : f32 to vector<8x128xf32>
    %252 = arith.select %20, %230, %251 : vector<8x128xi1>, vector<8x128xf32>
    %253 = arith.truncf %250 : vector<8x8xf32> to vector<8x8xbf16>
    %254 = arith.truncf %252 : vector<8x128xf32> to vector<8x128xbf16>
    %cst_113 = arith.constant dense<0.000000e+00> : vector<8x128xf32>
    %255 = tpu.matmul %253, %254, %cst_113 {dimension_numbers = #tpu.dot_dimension_numbers<[1], [0], [0], [1], [0, 0, 1, 1], [], []>} : vector<8x8xbf16>, vector<8x128xbf16>, vector<8x128xf32> -> vector<8x128xf32>
    %256 = arith.addf %231, %255 : vector<8x128xf32>
    %cst_114 = arith.constant 0.000000e+00 : f32
    %257 = vector.broadcast %cst_114 : f32 to vector<8x128xf32>
    %258 = arith.select %25, %228, %257 : vector<8x128xi1>, vector<8x128xf32>
    %259 = arith.truncf %258 : vector<8x128xf32> to vector<8x128xbf16>
    %260 = arith.truncf %229 : vector<8x128xf32> to vector<8x128xbf16>
    %cst_115 = arith.constant dense<0.000000e+00> : vector<8x8xf32>
    %261 = tpu.matmul %259, %260, %cst_115 {dimension_numbers = #tpu.dot_dimension_numbers<[1], [1], [0], [0], [0, 0, 1, 0], [], []>} : vector<8x128xbf16>, vector<8x128xbf16>, vector<8x8xf32> -> vector<8x8xf32>
    %cst_116 = arith.constant 2.500000e-01 : f32
    %262 = vector.broadcast %cst_116 : f32 to vector<8x8xf32>
    %263 = arith.mulf %261, %262 : vector<8x8xf32>
    %cst_117 = arith.constant -1.000000e+30 : f32
    %264 = vector.broadcast %cst_117 : f32 to vector<8x8xf32>
    %265 = arith.select %14, %263, %264 : vector<8x8xi1>, vector<8x8xf32>
    %cst_118 = arith.constant dense<0xFF800000> : vector<8xf32>
    %266 = vector.multi_reduction <maximumf>, %265, %cst_118 [1] : vector<8x8xf32> to vector<8xf32>
    %267 = vector.shape_cast %266 : vector<8xf32> to vector<8x1xf32>
    %268 = vector.broadcast %267 : vector<8x1xf32> to vector<8x8xf32>
    %269 = arith.subf %265, %268 : vector<8x8xf32>
    %270 = math.exp %269 : vector<8x8xf32>
    %cst_119 = arith.constant dense<0.000000e+00> : vector<8xf32>
    %271 = vector.multi_reduction <add>, %270, %cst_119 [1] : vector<8x8xf32> to vector<8xf32>
    %272 = vector.shape_cast %271 : vector<8xf32> to vector<8x1xf32>
    %273 = tpu.reciprocal %272 {approx = true} : vector<8x1xf32> -> vector<8x1xf32>
    %274 = vector.broadcast %273 : vector<8x1xf32> to vector<8x8xf32>
    %275 = arith.mulf %270, %274 : vector<8x8xf32>
    %cst_120 = arith.constant 0.000000e+00 : f32
    %276 = vector.broadcast %cst_120 : f32 to vector<8x128xf32>
    %277 = arith.select %25, %230, %276 : vector<8x128xi1>, vector<8x128xf32>
    %278 = arith.truncf %275 : vector<8x8xf32> to vector<8x8xbf16>
    %279 = arith.truncf %277 : vector<8x128xf32> to vector<8x128xbf16>
    %cst_121 = arith.constant dense<0.000000e+00> : vector<8x128xf32>
    %280 = tpu.matmul %278, %279, %cst_121 {dimension_numbers = #tpu.dot_dimension_numbers<[1], [0], [0], [1], [0, 0, 1, 1], [], []>} : vector<8x8xbf16>, vector<8x128xbf16>, vector<8x128xf32> -> vector<8x128xf32>
    %281 = arith.addf %256, %280 : vector<8x128xf32>
    %c1_122 = arith.constant 1 : index
    %c0_123 = arith.constant 0 : index
    %c0_124 = arith.constant 0 : index
    %282 = vector.load %arg8[%c1_122, %c0_123, %c0_124] : memref<2x128x128xbf16, #tpu.memory_space<vmem>>, vector<1x128x128xbf16>
    %283 = vector.shape_cast %282 : vector<1x128x128xbf16> to vector<128x128xbf16>
    %c1_125 = arith.constant 1 : index
    %c0_126 = arith.constant 0 : index
    %c0_127 = arith.constant 0 : index
    %284 = vector.load %arg9[%c1_125, %c0_126, %c0_127] : memref<2x1x128xf32, #tpu.memory_space<vmem>>, vector<1x1x128xf32>
    %285 = vector.shape_cast %284 : vector<1x1x128xf32> to vector<1x128xf32>
    %286 = arith.truncf %281 : vector<8x128xf32> to vector<8x128xbf16>
    %cst_128 = arith.constant dense<0.000000e+00> : vector<8x128xf32>
    %287 = tpu.matmul %286, %283, %cst_128 {dimension_numbers = #tpu.dot_dimension_numbers<[1], [0], [0], [1], [0, 0, 1, 1], [], []>} : vector<8x128xbf16>, vector<128x128xbf16>, vector<8x128xf32> -> vector<8x128xf32>
    %288 = vector.broadcast %285 : vector<1x128xf32> to vector<8x128xf32>
    %289 = arith.addf %287, %288 : vector<8x128xf32>
    %290 = arith.addf %188, %289 : vector<8x128xf32>
    %c1_129 = arith.constant 1 : index
    %c0_130 = arith.constant 0 : index
    %c0_131 = arith.constant 0 : index
    %291 = vector.load %arg10[%c1_129, %c0_130, %c0_131] : memref<2x1x128xf32, #tpu.memory_space<vmem>>, vector<1x1x128xf32>
    %292 = vector.shape_cast %291 : vector<1x1x128xf32> to vector<1x128xf32>
    %c1_132 = arith.constant 1 : index
    %c0_133 = arith.constant 0 : index
    %c0_134 = arith.constant 0 : index
    %293 = vector.load %arg11[%c1_132, %c0_133, %c0_134] : memref<2x1x128xf32, #tpu.memory_space<vmem>>, vector<1x1x128xf32>
    %294 = vector.shape_cast %293 : vector<1x1x128xf32> to vector<1x128xf32>
    %295 = tpu.iota {dimensions = array<i32: 1>} : vector<8x128xi32>
    %c32_i32_135 = arith.constant 32 : i32
    %296 = vector.broadcast %c32_i32_135 : i32 to vector<8x128xi32>
    %297 = arith.cmpi slt, %295, %296 : vector<8x128xi32>
    %cst_136 = arith.constant 0.000000e+00 : f32
    %298 = vector.broadcast %cst_136 : f32 to vector<8x128xf32>
    %299 = arith.select %297, %290, %298 : vector<8x128xi1>, vector<8x128xf32>
    %cst_137 = arith.constant dense<0.000000e+00> : vector<8xf32>
    %300 = vector.multi_reduction <add>, %299, %cst_137 [1] : vector<8x128xf32> to vector<8xf32>
    %301 = vector.shape_cast %300 : vector<8xf32> to vector<8x1xf32>
    %cst_138 = arith.constant 3.125000e-02 : f32
    %302 = vector.broadcast %cst_138 : f32 to vector<8x1xf32>
    %303 = arith.mulf %301, %302 : vector<8x1xf32>
    %304 = vector.broadcast %303 : vector<8x1xf32> to vector<8x128xf32>
    %305 = arith.subf %290, %304 : vector<8x128xf32>
    %cst_139 = arith.constant 0.000000e+00 : f32
    %306 = vector.broadcast %cst_139 : f32 to vector<8x128xf32>
    %307 = arith.select %297, %305, %306 : vector<8x128xi1>, vector<8x128xf32>
    %308 = arith.mulf %307, %307 : vector<8x128xf32>
    %cst_140 = arith.constant dense<0.000000e+00> : vector<8xf32>
    %309 = vector.multi_reduction <add>, %308, %cst_140 [1] : vector<8x128xf32> to vector<8xf32>
    %310 = vector.shape_cast %309 : vector<8xf32> to vector<8x1xf32>
    %cst_141 = arith.constant 3.125000e-02 : f32
    %311 = vector.broadcast %cst_141 : f32 to vector<8x1xf32>
    %312 = arith.mulf %310, %311 : vector<8x1xf32>
    %cst_142 = arith.constant 9.99999974E-6 : f32
    %313 = vector.broadcast %cst_142 : f32 to vector<8x1xf32>
    %314 = arith.addf %312, %313 : vector<8x1xf32>
    %315 = math.rsqrt %314 : vector<8x1xf32>
    %316 = vector.broadcast %315 : vector<8x1xf32> to vector<8x128xf32>
    %317 = arith.mulf %307, %316 : vector<8x128xf32>
    %318 = vector.broadcast %292 : vector<1x128xf32> to vector<8x128xf32>
    %319 = arith.mulf %317, %318 : vector<8x128xf32>
    %320 = vector.broadcast %294 : vector<1x128xf32> to vector<8x128xf32>
    %321 = arith.addf %319, %320 : vector<8x128xf32>
    %c1_143 = arith.constant 1 : index
    %c0_144 = arith.constant 0 : index
    %c0_145 = arith.constant 0 : index
    %322 = vector.load %arg12[%c1_143, %c0_144, %c0_145] : memref<2x128x128xbf16, #tpu.memory_space<vmem>>, vector<1x128x128xbf16>
    %323 = vector.shape_cast %322 : vector<1x128x128xbf16> to vector<128x128xbf16>
    %c1_146 = arith.constant 1 : index
    %c0_147 = arith.constant 0 : index
    %c0_148 = arith.constant 0 : index
    %324 = vector.load %arg13[%c1_146, %c0_147, %c0_148] : memref<2x1x128xf32, #tpu.memory_space<vmem>>, vector<1x1x128xf32>
    %325 = vector.shape_cast %324 : vector<1x1x128xf32> to vector<1x128xf32>
    %326 = arith.truncf %321 : vector<8x128xf32> to vector<8x128xbf16>
    %cst_149 = arith.constant dense<0.000000e+00> : vector<8x128xf32>
    %327 = tpu.matmul %326, %323, %cst_149 {dimension_numbers = #tpu.dot_dimension_numbers<[1], [0], [0], [1], [0, 0, 1, 1], [], []>} : vector<8x128xbf16>, vector<128x128xbf16>, vector<8x128xf32> -> vector<8x128xf32>
    %328 = vector.broadcast %325 : vector<1x128xf32> to vector<8x128xf32>
    %329 = arith.addf %327, %328 : vector<8x128xf32>
    %cst_150 = arith.constant 5.000000e-01 : f32
    %330 = vector.broadcast %cst_150 : f32 to vector<8x128xf32>
    %331 = arith.mulf %330, %329 : vector<8x128xf32>
    %cst_151 = arith.constant 4.471500e-02 : f32
    %332 = vector.broadcast %cst_151 : f32 to vector<8x128xf32>
    %333 = arith.mulf %332, %329 : vector<8x128xf32>
    %334 = arith.mulf %333, %329 : vector<8x128xf32>
    %335 = arith.mulf %334, %329 : vector<8x128xf32>
    %336 = arith.addf %329, %335 : vector<8x128xf32>
    %cst_152 = arith.constant 0.797884583 : f32
    %337 = vector.broadcast %cst_152 : f32 to vector<8x128xf32>
    %338 = arith.mulf %337, %336 : vector<8x128xf32>
    %339 = math.tanh %338 : vector<8x128xf32>
    %cst_153 = arith.constant 1.000000e+00 : f32
    %340 = vector.broadcast %cst_153 : f32 to vector<8x128xf32>
    %341 = arith.addf %340, %339 : vector<8x128xf32>
    %342 = arith.mulf %331, %341 : vector<8x128xf32>
    %c1_154 = arith.constant 1 : index
    %c0_155 = arith.constant 0 : index
    %c0_156 = arith.constant 0 : index
    %343 = vector.load %arg14[%c1_154, %c0_155, %c0_156] : memref<2x128x128xbf16, #tpu.memory_space<vmem>>, vector<1x128x128xbf16>
    %344 = vector.shape_cast %343 : vector<1x128x128xbf16> to vector<128x128xbf16>
    %c1_157 = arith.constant 1 : index
    %c0_158 = arith.constant 0 : index
    %c0_159 = arith.constant 0 : index
    %345 = vector.load %arg15[%c1_157, %c0_158, %c0_159] : memref<2x1x128xf32, #tpu.memory_space<vmem>>, vector<1x1x128xf32>
    %346 = vector.shape_cast %345 : vector<1x1x128xf32> to vector<1x128xf32>
    %347 = arith.truncf %342 : vector<8x128xf32> to vector<8x128xbf16>
    %cst_160 = arith.constant dense<0.000000e+00> : vector<8x128xf32>
    %348 = tpu.matmul %347, %344, %cst_160 {dimension_numbers = #tpu.dot_dimension_numbers<[1], [0], [0], [1], [0, 0, 1, 1], [], []>} : vector<8x128xbf16>, vector<128x128xbf16>, vector<8x128xf32> -> vector<8x128xf32>
    %349 = vector.broadcast %346 : vector<1x128xf32> to vector<8x128xf32>
    %350 = arith.addf %348, %349 : vector<8x128xf32>
    %351 = arith.addf %290, %350 : vector<8x128xf32>
    %c0_161 = arith.constant 0 : index
    %c0_162 = arith.constant 0 : index
    %352 = vector.load %arg16[%c0_161, %c0_162] : memref<1x128xf32, #tpu.memory_space<vmem>>, vector<1x128xf32>
    %c0_163 = arith.constant 0 : index
    %c0_164 = arith.constant 0 : index
    %353 = vector.load %arg17[%c0_163, %c0_164] : memref<1x128xf32, #tpu.memory_space<vmem>>, vector<1x128xf32>
    %354 = tpu.iota {dimensions = array<i32: 1>} : vector<8x128xi32>
    %c32_i32_165 = arith.constant 32 : i32
    %355 = vector.broadcast %c32_i32_165 : i32 to vector<8x128xi32>
    %356 = arith.cmpi slt, %354, %355 : vector<8x128xi32>
    %cst_166 = arith.constant 0.000000e+00 : f32
    %357 = vector.broadcast %cst_166 : f32 to vector<8x128xf32>
    %358 = arith.select %356, %351, %357 : vector<8x128xi1>, vector<8x128xf32>
    %cst_167 = arith.constant dense<0.000000e+00> : vector<8xf32>
    %359 = vector.multi_reduction <add>, %358, %cst_167 [1] : vector<8x128xf32> to vector<8xf32>
    %360 = vector.shape_cast %359 : vector<8xf32> to vector<8x1xf32>
    %cst_168 = arith.constant 3.125000e-02 : f32
    %361 = vector.broadcast %cst_168 : f32 to vector<8x1xf32>
    %362 = arith.mulf %360, %361 : vector<8x1xf32>
    %363 = vector.broadcast %362 : vector<8x1xf32> to vector<8x128xf32>
    %364 = arith.subf %351, %363 : vector<8x128xf32>
    %cst_169 = arith.constant 0.000000e+00 : f32
    %365 = vector.broadcast %cst_169 : f32 to vector<8x128xf32>
    %366 = arith.select %356, %364, %365 : vector<8x128xi1>, vector<8x128xf32>
    %367 = arith.mulf %366, %366 : vector<8x128xf32>
    %cst_170 = arith.constant dense<0.000000e+00> : vector<8xf32>
    %368 = vector.multi_reduction <add>, %367, %cst_170 [1] : vector<8x128xf32> to vector<8xf32>
    %369 = vector.shape_cast %368 : vector<8xf32> to vector<8x1xf32>
    %cst_171 = arith.constant 3.125000e-02 : f32
    %370 = vector.broadcast %cst_171 : f32 to vector<8x1xf32>
    %371 = arith.mulf %369, %370 : vector<8x1xf32>
    %cst_172 = arith.constant 9.99999974E-6 : f32
    %372 = vector.broadcast %cst_172 : f32 to vector<8x1xf32>
    %373 = arith.addf %371, %372 : vector<8x1xf32>
    %374 = math.rsqrt %373 : vector<8x1xf32>
    %375 = vector.broadcast %374 : vector<8x1xf32> to vector<8x128xf32>
    %376 = arith.mulf %366, %375 : vector<8x128xf32>
    %377 = vector.broadcast %352 : vector<1x128xf32> to vector<8x128xf32>
    %378 = arith.mulf %376, %377 : vector<8x128xf32>
    %379 = vector.broadcast %353 : vector<1x128xf32> to vector<8x128xf32>
    %380 = arith.addf %378, %379 : vector<8x128xf32>
    %381 = arith.truncf %380 : vector<8x128xf32> to vector<8x128xbf16>
    %c0_173 = arith.constant 0 : index
    %c0_174 = arith.constant 0 : index
    %382 = vector.load %arg18[%c0_173, %c0_174] : memref<128x128xbf16, #tpu.memory_space<vmem>>, vector<128x128xbf16>
    %cst_175 = arith.constant dense<0.000000e+00> : vector<8x128xf32>
    %383 = tpu.matmul %381, %382, %cst_175 {dimension_numbers = #tpu.dot_dimension_numbers<[1], [0], [0], [1], [0, 0, 1, 1], [], []>} : vector<8x128xbf16>, vector<128x128xbf16>, vector<8x128xf32> -> vector<8x128xf32>
    %c0_176 = arith.constant 0 : index
    %c0_177 = arith.constant 0 : index
    %384 = vector.load %arg19[%c0_176, %c0_177] : memref<8x128xf32, #tpu.memory_space<vmem>>, vector<8x128xf32>
    tpu.vector_store %arg19[%c0_176, %c0_177], %383 {strides = array<i32>} : memref<8x128xf32, #tpu.memory_space<vmem>>, vector<8x128xf32>,
    return
  }
  func.func @transform_0(%arg0: i32) -> (i32, i32) {
    %c0_i32 = arith.constant 0 : i32
    %c0_i32_0 = arith.constant 0 : i32
    return %arg0, %c0_i32 : i32, i32
  }
  func.func @transform_1(%arg0: i32) -> (i32, i32) {
    %c0_i32 = arith.constant 0 : i32
    %c0_i32_0 = arith.constant 0 : i32
    %c0_i32_1 = arith.constant 0 : i32
    return %c0_i32, %c0_i32_0 : i32, i32
  }
  func.func @transform_2(%arg0: i32) -> (i32, i32) {
    %c0_i32 = arith.constant 0 : i32
    %c0_i32_0 = arith.constant 0 : i32
    %c0_i32_1 = arith.constant 0 : i32
    return %c0_i32, %c0_i32_0 : i32, i32
  }
  func.func @transform_3(%arg0: i32) -> (i32, i32, i32) {
    %c0_i32 = arith.constant 0 : i32
    %c0_i32_0 = arith.constant 0 : i32
    %c0_i32_1 = arith.constant 0 : i32
    %c0_i32_2 = arith.constant 0 : i32
    return %c0_i32, %c0_i32_0, %c0_i32_1 : i32, i32, i32
  }
  func.func @transform_4(%arg0: i32) -> (i32, i32, i32) {
    %c0_i32 = arith.constant 0 : i32
    %c0_i32_0 = arith.constant 0 : i32
    %c0_i32_1 = arith.constant 0 : i32
    %c0_i32_2 = arith.constant 0 : i32
    return %c0_i32, %c0_i32_0, %c0_i32_1 : i32, i32, i32
  }
  func.func @transform_5(%arg0: i32) -> (i32, i32, i32) {
    %c0_i32 = arith.constant 0 : i32
    %c0_i32_0 = arith.constant 0 : i32
    %c0_i32_1 = arith.constant 0 : i32
    %c0_i32_2 = arith.constant 0 : i32
    return %c0_i32, %c0_i32_0, %c0_i32_1 : i32, i32, i32
  }
  func.func @transform_6(%arg0: i32) -> (i32, i32, i32) {
    %c0_i32 = arith.constant 0 : i32
    %c0_i32_0 = arith.constant 0 : i32
    %c0_i32_1 = arith.constant 0 : i32
    %c0_i32_2 = arith.constant 0 : i32
    return %c0_i32, %c0_i32_0, %c0_i32_1 : i32, i32, i32
  }
  func.func @transform_7(%arg0: i32) -> (i32, i32, i32) {
    %c0_i32 = arith.constant 0 : i32
    %c0_i32_0 = arith.constant 0 : i32
    %c0_i32_1 = arith.constant 0 : i32
    %c0_i32_2 = arith.constant 0 : i32
    return %c0_i32, %c0_i32_0, %c0_i32_1 : i32, i32, i32
  }
  func.func @transform_8(%arg0: i32) -> (i32, i32, i32) {
    %c0_i32 = arith.constant 0 : i32
    %c0_i32_0 = arith.constant 0 : i32
    %c0_i32_1 = arith.constant 0 : i32
    %c0_i32_2 = arith.constant 0 : i32
    return %c0_i32, %c0_i32_0, %c0_i32_1 : i32, i32, i32
  }
  func.func @transform_9(%arg0: i32) -> (i32, i32, i32) {
    %c0_i32 = arith.constant 0 : i32
    %c0_i32_0 = arith.constant 0 : i32
    %c0_i32_1 = arith.constant 0 : i32
    %c0_i32_2 = arith.constant 0 : i32
    return %c0_i32, %c0_i32_0, %c0_i32_1 : i32, i32, i32
  }
  func.func @transform_10(%arg0: i32) -> (i32, i32, i32) {
    %c0_i32 = arith.constant 0 : i32
    %c0_i32_0 = arith.constant 0 : i32
    %c0_i32_1 = arith.constant 0 : i32
    %c0_i32_2 = arith.constant 0 : i32
    return %c0_i32, %c0_i32_0, %c0_i32_1 : i32, i32, i32
  }
  func.func @transform_11(%arg0: i32) -> (i32, i32, i32) {
    %c0_i32 = arith.constant 0 : i32
    %c0_i32_0 = arith.constant 0 : i32
    %c0_i32_1 = arith.constant 0 : i32
    %c0_i32_2 = arith.constant 0 : i32
    return %c0_i32, %c0_i32_0, %c0_i32_1 : i32, i32, i32
  }
  func.func @transform_12(%arg0: i32) -> (i32, i32, i32) {
    %c0_i32 = arith.constant 0 : i32
    %c0_i32_0 = arith.constant 0 : i32
    %c0_i32_1 = arith.constant 0 : i32
    %c0_i32_2 = arith.constant 0 : i32
    return %c0_i32, %c0_i32_0, %c0_i32_1 : i32, i32, i32
  }
  func.func @transform_13(%arg0: i32) -> (i32, i32, i32) {
    %c0_i32 = arith.constant 0 : i32
    %c0_i32_0 = arith.constant 0 : i32
    %c0_i32_1 = arith.constant 0 : i32
    %c0_i32_2 = arith.constant 0 : i32
    return %c0_i32, %c0_i32_0, %c0_i32_1 : i32, i32, i32
  }
  func.func @transform_14(%arg0: i32) -> (i32, i32, i32) {
    %c0_i32 = arith.constant 0 : i32
    %c0_i32_0 = arith.constant 0 : i32
    %c0_i32_1 = arith.constant 0 : i32
    %c0_i32_2 = arith.constant 0 : i32
    return %c0_i32, %c0_i32_0, %c0_i32_1 : i32, i32, i32
  }
  func.func @transform_15(%arg0: i32) -> (i32, i32) {
    %c0_i32 = arith.constant 0 : i32
    %c0_i32_0 = arith.constant 0 : i32
    %c0_i32_1 = arith.constant 0 : i32
    return %c0_i32, %c0_i32_0 : i32, i32
  }
  func.func @transform_16(%arg0: i32) -> (i32, i32) {
    %c0_i32 = arith.constant 0 : i32
    %c0_i32_0 = arith.constant 0 : i32
    %c0_i32_1 = arith.constant 0 : i32
    return %c0_i32, %c0_i32_0 : i32, i32
  }
  func.func @transform_17(%arg0: i32) -> (i32, i32) {
    %c0_i32 = arith.constant 0 : i32
    %c0_i32_0 = arith.constant 0 : i32
    %c0_i32_1 = arith.constant 0 : i32
    return %c0_i32, %c0_i32_0 : i32, i32
  }
  func.func @transform_18(%arg0: i32) -> (i32, i32) {
    %c0_i32 = arith.constant 0 : i32
    %c0_i32_0 = arith.constant 0 : i32
    return %arg0, %c0_i32 : i32, i32
  }
}

</mosaic_0001>

<bundles_post_ra>
// kernel: _lambda_.1
= control target key start
LH: loop header
LB: loop body
LE: loop exit
PB: predicated region body
PF: predicated region fallthrough
CT: control target
= control target key end

     0   :  { %s5011_s0 = inlined_call_operand.vmem [shape: s32[16,1], index: 0, kind: input, shape index: {}]   ;;  %s5012_s1 = inlined_call_operand.vmem [shape: bf16[128,128], index: 1, kind: input, shape index: {}]   ;;  %s5013_s2 = inlined_call_operand.hbm [shape: f32[16,128], index: 2, kind: input, shape index: {}]   ;;  %s5014_s3 = inlined_call_operand.vmem [shape: f32[2,1,128], index: 3, kind: input, shape index: {}]   ;;  %s5015_s4 = inlined_call_operand.vmem [shape: f32[2,1,128], index: 4, kind: input, shape index: {}]   ;;  %s5016_s5 = inlined_call_operand.hbm [shape: bf16[2,128,384], index: 5, kind: input, shape index: {}]   ;;  %s5017_s6 = inlined_call_operand.vmem [shape: f32[2,1,384], index: 6, kind: input, shape index: {}]   ;;  %s5018_s7 = inlined_call_operand.hbm [shape: bf16[2,128,128], index: 7, kind: input, shape index: {}]   ;;  %s5019_s8 = inlined_call_operand.vmem [shape: f32[2,1,128], index: 8, kind: input, shape index: {}]   ;;  %s5020_s9 = inlined_call_operand.vmem [shape: f32[2,1,128], index: 9, kind: input, shape index: {}]   ;;  %s5021_s10 = inlined_call_operand.hbm [shape: f32[2,1,128], index: 10, kind: input, shape index: {}]   ;;  %s5022_s11 = inlined_call_operand.hbm [shape: bf16[2,128,128], index: 11, kind: input, shape index: {}]   ;;  %s5023_s12 = inlined_call_operand.hbm [shape: f32[2,1,128], index: 12, kind: input, shape index: {}]   ;;  %s5024_s13 = inlined_call_operand.hbm [shape: bf16[2,128,128], index: 13, kind: input, shape index: {}]   ;;  %s5025_s14 = inlined_call_operand.hbm [shape: f32[2,1,128], index: 14, kind: input, shape index: {}]   ;;  %s5026_s15 = inlined_call_operand.hbm [shape: f32[1,128], index: 15, kind: input, shape index: {}]   ;;  %s5027_s16 = inlined_call_operand.hbm [shape: f32[1,128], index: 16, kind: input, shape index: {}]   ;;  %s5028_s17 = inlined_call_operand.hbm [shape: bf16[128,128], index: 17, kind: input, shape index: {}]   ;;  %s5029_s18 = inlined_call_operand.hbm [shape: f32[16,128], index: 18, kind: output, shape index: {}]  }
   0x1   :  { %5046 = sst [smem:[#allocation36_spill]] %s5011_s0 }
   0x2   :  { %5047 = sst [smem:[#allocation37_spill]] %s5012_s1 }
   0x3   :  { %5048 = sst [smem:[#allocation38_spill]] %s5013_s2 }
   0x4   :  { %5049 = sst [smem:[#allocation39_spill]] %s5016_s5 }
   0x5   :  { %5050 = sst [smem:[#allocation40_spill]] %s5020_s9 }
   0x6   :  { %5051 = sst [smem:[#allocation41_spill]] %s5021_s10 }
   0x7   :  { %5052 = sst [smem:[#allocation42_spill]] %s5023_s12 }
   0x8   :  { %5053 = sst [smem:[#allocation43_spill]] %s5025_s14 }
   0x9   :  { %5054 = sst [smem:[#allocation44_spill]] %s5029_s18 }
   0xa   :  { %23 = vsyncpa [#allocation3], 0 }
   0xb   :  { %24 = vsyncpa [#allocation6], 0 }
   0xc   :  { %25 = vsyncpa [#allocation9], 0 }
   0xd   :  { %26 = vsyncpa [#allocation12], 0 }
   0xe   :  { %27 = vsyncpa [#allocation15], 0 }
   0xf   :  { %28 = vsyncpa [#allocation18], 0 }
  0x10   :  { %29 = vsyncpa [#allocation4], 0 }
  0x11   :  { %31 = vsyncpa [#allocation4 + $0x1], 0  ;;  %s4301_s27 = smov 0   ;;  %s4303_s28 = smov 0  }
  0x12   :  { %s4305_s29 = smov 0   ;;  %s4307_s30 = smov 0  }
  0x13 LB: > { %5055 = sst [smem:[#allocation28_spill]] %s4170_s27  ;;  %s4322_s0 = sadd.s32 4294967295, %s4182_s30   ;;  %s4182_s30 = sphi %s4307_s30, %s5102_s30   ;;  %s4178_s29 = sphi %s4305_s29, %s5105_s29   ;;  %s4174_s28 = sphi %s4303_s28, %s5104_s28   ;;  %s4170_s27 = sphi %s4301_s27, %s5103_s27  }
  0x14   : > { %5056 = sst [smem:[#allocation29_spill]] %s4174_s28  ;;  %s2924_s19 = sadd.s32 4294967294, %s4182_s30  }
  0x15   : > { %5057 = sst [smem:[#allocation30_spill]] %s4178_s29  ;;  %s4326_s1 = sadd.s32 1, %s4182_s30  }
  0x16   : > { %5058 = sst [smem:[#allocation31_spill]] %s4182_s30  ;;  %s427_s20 = sadd.s32 1, %s4178_s29 }
  0x17   : > { %5059 = sst [smem:[#allocation32_spill]] %s4326_s1  ;;  %s424_s21 = ssub.s32 %s4182_s30, %s4326_s1 }
  0x18   : > { %p437_p0 = scmp.ne.s32.totalorder %s4178_s29, %s4174_s28  ;;  %p425_p1 = scmp.eq.s32.totalorder %s424_s21, 0 }
  0x19   : > { %p438_p2 = scmp.eq.s32.totalorder %s4322_s0, 1  ;;  %p443_p3 = scmp.ne.s32.totalorder %s4174_s28, %s4170_s27 }
  0x1a   : > { %p444_p4 = scmp.eq.s32.totalorder %s2924_s19, 1  ;;  %p2925_p7 = scmp.ge.s32.totalorder %s4182_s30, 1 }
  0x1b   : > { %s4337_s22 = scalar_select %p425_p1, %s4178_s29, %s427_s20  }
  0x1c   : > { %p4339_p5 = por %p438_p2, %p437_p0  ;;  %p4343_p6 = por %p444_p4, %p443_p3 }
  0x1d   : > { %5060 = sst [smem:[#allocation33_spill]] %s4337_s22  ;;  %p451_p8 = scmp.lt.s32.totalorder %s4182_s30, 3 }
  0x1e   : > { %s5061_s2 = scalar_select %p4339_p5, 1, 0 }
  0x1f   : > { %s5063_s23 = scalar_select %p4343_p6, 1, 0 }
  0x20   : > { %5062 = sst [smem:[#allocation34_spill]] %s5061_s2  ;;  %p5038_p9 = scmp.eq.s32.totalorder %s4322_s0, 0 }
  0x21   : > { %5064 = sst [smem:[#allocation35_spill]] %s5063_s23  ;;  %p4350_p10 = pnand %p2925_p7, %p451_p8 }
  0x22   : > { %s4184_s25 = smov [#allocation5]   ;;  %s4185_s20 = smov [#allocation8]  }
  0x23   : > { %s5065_s24 = scalar_select %p4350_p10, 1, 0 }
  0x24   : > { %s483_s26 = sshll.u32 %s4184_s25, 4  ;;  %p3515_p11 = pneg %p4350_p10  ;;  %s484_s26 = int_to_ptr.vmem [resolvable:$true] %s483_s26 }
  0x25   : > { %s518_s21 = sshll.u32 %s4185_s20, 4  ;;  %s5067_s5 = sld [smem:[#allocation39_spill]]  ;;  %s4362_s21 = int_to_ptr.vmem [resolvable:$true] %s518_s21 }
  0x26   : > { %p4358_p12 = pnand %p5038_p9, %p3515_p11 }
  0x28   : > { %p4372_p0 = pneg %p4358_p12 }
  0x2b   : > { %s3788_s1 = scalar_lea.hbm %s5067_s5, 6144 }
  0x2c   : > { %p3789_p13 = scmp.ne.s32.totalorder %s5067_s5, %s3788_s1  ;;  %p3795_p3 = scmp.lt.u32.totalorder %s3788_s1, %s5067_s5 }
  0x2e   : > { %p3791_p1 = pnand %p4372_p0, %p3789_p13 }
  0x30   : > { %p3792_p2 = pneg %p3791_p1 }
  0x32   : > { %p3797_p4 = pnand %p3795_p3, %p3792_p2 }
  0x34   : > { %3800 = shalt.err (!%p3797_p4)
}
  0x35   : > { %s3801_s29 = scalar_lea.vmem %s484_s26, 6144  ;;  %p3809_p9 = scmp.lt.s32.totalorder %s484_s26, %s484_s26 }
  0x36   : > { %p3802_p7 = scmp.ne.s32.totalorder %s484_s26, %s3801_s29  ;;  %p3810_p6 = scmp.lt.s32.totalorder %s3801_s29, %s3801_s29 }
  0x38   : > { %p3804_p8 = pnand %p3802_p7, %p4372_p0  ;;  %p3811_p5 = por %p3810_p6, %p3809_p9 }
  0x3a   : > { %p3805_p11 = pneg %p3804_p8 }
  0x3c   : > { %p3812_p10 = pnand %p3811_p5, %p3805_p11 }
  0x3e   : > { %3815 = shalt.err (!%p3812_p10)
}
  0x3f   : > { %s4186_s27 = smov 192   ;;  %s4187_s22 = smov 12  }
  0x40   : > { %3521 = dma.hbm_to_vmem [thread:$0]  (!%p4358_p12), %s5067_s5, 6144, %s484_s26, [#allocation6], %s4186_s27, %s4186_s27, %s4187_s22  }
  0x41   : > { %s5069_s10 = sld [smem:[#allocation41_spill]] }
  0x47   : > { %s3816_s18 = scalar_lea.hbm %s5069_s10, 32 }
  0x48   : > { %p3817_p13 = scmp.ne.s32.totalorder %s5069_s10, %s3816_s18  ;;  %p3823_p9 = scmp.lt.u32.totalorder %s3816_s18, %s5069_s10 }
  0x4a   : > { %p3819_p5 = pnand %p3817_p13, %p4372_p0 }
  0x4c   : > { %p3820_p6 = pneg %p3819_p5 }
  0x4e   : > { %p3825_p10 = pnand %p3823_p9, %p3820_p6 }
  0x50   : > { %3828 = shalt.err (!%p3825_p10)
}
  0x51   : > { %s3829_s26 = scalar_lea.vmem %s4362_s21, 32  ;;  %p3837_p4 = scmp.lt.s32.totalorder %s4362_s21, %s4362_s21 }
  0x52   : > { %p3830_p1 = scmp.ne.s32.totalorder %s4362_s21, %s3829_s26  ;;  %p3838_p7 = scmp.lt.s32.totalorder %s3829_s26, %s3829_s26 }
  0x54   : > { %p3832_p2 = pnand %p3830_p1, %p4372_p0  ;;  %p3839_p8 = por %p3838_p7, %p3837_p4 }
  0x56   : > { %p3833_p3 = pneg %p3832_p2 }
  0x58   : > { %p3840_p11 = pnand %p3839_p8, %p3833_p3 }
  0x5a   : > { %3843 = shalt.err (!%p3840_p11)
}
  0x5b   : > { %s4188_s28 = smov 16   ;;  %s4189_s9 = smov 1  }
  0x5c   : > { %3527 = dma.hbm_to_vmem [thread:$0]  (!%p4358_p12), %s5069_s10, 32, %s4362_s21, [#allocation9], %s4188_s28, %s4188_s28, %s4189_s9  }
  0x5d   : > { %s4190_s27 = smov [#allocation11]   ;;  %s4191_s30 = smov [#allocation14]  }
  0x5e   : > { %s544_s22 = sshll.u32 %s4190_s27, 4  ;;  %s570_s1 = sshll.u32 %s4191_s30, 4  ;;  %s545_s22 = int_to_ptr.vmem [resolvable:$true] %s544_s22  ;;  %s4414_s1 = int_to_ptr.vmem [resolvable:$true] %s570_s1 }
  0x5f   : > { %s5070_s12 = sld [smem:[#allocation42_spill]] }
  0x65   : > { %s3844_s29 = scalar_lea.hbm %s5070_s12, 32 }
  0x66   : > { %p3845_p13 = scmp.ne.s32.totalorder %s5070_s12, %s3844_s29  ;;  %p3851_p9 = scmp.lt.u32.totalorder %s3844_s29, %s5070_s12 }
  0x68   : > { %p3847_p5 = pnand %p3845_p13, %p4372_p0 }
  0x6a   : > { %p3848_p6 = pneg %p3847_p5 }
  0x6c   : > { %p3853_p10 = pnand %p3851_p9, %p3848_p6 }
  0x6e   : > { %3856 = shalt.err (!%p3853_p10)
}
  0x6f   : > { %s3857_s2 = scalar_lea.vmem %s545_s22, 32  ;;  %p3865_p4 = scmp.lt.s32.totalorder %s545_s22, %s545_s22 }
  0x70   : > { %p3858_p1 = scmp.ne.s32.totalorder %s545_s22, %s3857_s2  ;;  %p3866_p7 = scmp.lt.s32.totalorder %s3857_s2, %s3857_s2 }
  0x72   : > { %p3860_p2 = pnand %p3858_p1, %p4372_p0  ;;  %p3867_p8 = por %p3866_p7, %p3865_p4 }
  0x74   : > { %p3861_p3 = pneg %p3860_p2 }
  0x76   : > { %p3868_p11 = pnand %p3867_p8, %p3861_p3 }
  0x78   : > { %3871 = shalt.err (!%p3868_p11)
}
  0x79   : > { %3533 = dma.hbm_to_vmem [thread:$0]  (!%p4358_p12), %s5070_s12, 32, %s545_s22, [#allocation12], %s4188_s28, %s4188_s28, %s4189_s9  }
  0x7a   : > { %s5071_s14 = sld [smem:[#allocation43_spill]] }
  0x80   : > { %s3872_s20 = scalar_lea.hbm %s5071_s14, 32 }
  0x81   : > { %p3873_p13 = scmp.ne.s32.totalorder %s5071_s14, %s3872_s20  ;;  %p3879_p9 = scmp.lt.u32.totalorder %s3872_s20, %s5071_s14 }
  0x83   : > { %p3875_p5 = pnand %p3873_p13, %p4372_p0 }
  0x85   : > { %p3876_p6 = pneg %p3875_p5 }
  0x87   : > { %p3881_p10 = pnand %p3879_p9, %p3876_p6 }
  0x89   : > { %3884 = shalt.err (!%p3881_p10)
}
  0x8a   : > { %s3885_s22 = scalar_lea.vmem %s4414_s1, 32  ;;  %p3893_p4 = scmp.lt.s32.totalorder %s4414_s1, %s4414_s1 }
  0x8b   : > { %p3886_p1 = scmp.ne.s32.totalorder %s4414_s1, %s3885_s22  ;;  %p3894_p7 = scmp.lt.s32.totalorder %s3885_s22, %s3885_s22 }
  0x8d   : > { %p3888_p2 = pnand %p3886_p1, %p4372_p0  ;;  %p3895_p8 = por %p3894_p7, %p3893_p4 }
  0x8f   : > { %p3889_p3 = pneg %p3888_p2 }
  0x91   : > { %p3896_p11 = pnand %p3895_p8, %p3889_p3 }
  0x93   : > { %3899 = shalt.err (!%p3896_p11)
}
  0x94   : > { %3539 = dma.hbm_to_vmem [thread:$0]  (!%p4358_p12), %s5071_s14, 32, %s4414_s1, [#allocation15], %s4188_s28, %s4188_s28, %s4189_s9  }
  0x95   : > { %s4192_s27 = smov [#allocation17]   ;;  %s4193_s23 = smov [#allocation2]  }
  0x96   : > { %s595_s30 = sshll.u32 %s4192_s27, 4  ;;  %s467_s20 = sshll.u32 %s4193_s23, 4  ;;  %s596_s30 = int_to_ptr.vmem [resolvable:$true] %s595_s30  ;;  %s4463_s20 = int_to_ptr.vmem [resolvable:$true] %s467_s20 }
  0x97   : > { %s3900_s18 = scalar_lea.hbm %s5027_s16, 16 }
  0x98   : > { %p3901_p13 = scmp.ne.s32.totalorder %s5027_s16, %s3900_s18  ;;  %p3907_p9 = scmp.lt.u32.totalorder %s3900_s18, %s5027_s16 }
  0x9a   : > { %p3903_p5 = pnand %p3901_p13, %p4372_p0 }
  0x9c   : > { %p3904_p6 = pneg %p3903_p5 }
  0x9e   : > { %p3909_p10 = pnand %p3907_p9, %p3904_p6 }
  0xa0   : > { %3912 = shalt.err (!%p3909_p10)
}
  0xa1   : > { %s3913_s9 = scalar_lea.vmem %s596_s30, 16  ;;  %s3920_s1 = scalar_lea.vmem %s596_s30, 32 }
  0xa2   : > { %p3914_p1 = scmp.ne.s32.totalorder %s596_s30, %s3913_s9  ;;  %p3921_p4 = scmp.lt.s32.totalorder %s596_s30, %s596_s30 }
  0xa3   : > { %p3922_p7 = scmp.lt.s32.totalorder %s3920_s1, %s3913_s9 }
  0xa4   : > { %p3916_p2 = pnand %p3914_p1, %p4372_p0 }
  0xa5   : > { %p3923_p8 = por %p3922_p7, %p3921_p4 }
  0xa6   : > { %p3917_p3 = pneg %p3916_p2 }
  0xa8   : > { %p3924_p11 = pnand %p3923_p8, %p3917_p3 }
  0xaa   : > { %3927 = shalt.err (!%p3924_p11)
}
  0xab   : > { %3545 = dma.hbm_to_vmem [thread:$0]  (!%p4358_p12), %s5027_s16, 16, %s596_s30, [#allocation18]  }
  0xac   : > { %s5072_s26 = sld [smem:[#allocation38_spill]] }
  0xb2   : > { %s3928_s18 = scalar_lea.hbm %s5072_s26, 128  ;;  %s3933_s9 = scalar_lea.hbm %s5072_s26, 256 }
  0xb3   : > { %p3929_p13 = scmp.ne.s32.totalorder %s5072_s26, %s3928_s18  ;;  %p3934_p9 = scmp.lt.u32.totalorder %s3933_s9, %s3928_s18 }
  0xb4   : > { %p3935_p10 = scmp.lt.u32.totalorder %s3928_s18, %s5072_s26 }
  0xb5   : > { %p3931_p5 = pnand %p3929_p13, %p4372_p0 }
  0xb6   : > { %p3936_p1 = por %p3935_p10, %p3934_p9 }
  0xb7   : > { %p3932_p6 = pneg %p3931_p5 }
  0xb9   : > { %p3937_p2 = pnand %p3936_p1, %p3932_p6 }
  0xbb   : > { %3940 = shalt.err (!%p3937_p2)
}
  0xbc   : > { %s3941_s30 = scalar_lea.vmem %s4463_s20, 128  ;;  %p3949_p8 = scmp.lt.s32.totalorder %s4463_s20, %s4463_s20 }
  0xbd   : > { %p3942_p3 = scmp.ne.s32.totalorder %s4463_s20, %s3941_s30  ;;  %p3950_p11 = scmp.lt.s32.totalorder %s3941_s30, %s3941_s30 }
  0xbf   : > { %p3944_p4 = pnand %p3942_p3, %p4372_p0  ;;  %p3951_p13 = por %p3950_p11, %p3949_p8 }
  0xc1   : > { %p3945_p7 = pneg %p3944_p4 }
  0xc3   : > { %p3952_p5 = pnand %p3951_p13, %p3945_p7 }
  0xc5   : > { %3955 = shalt.err (!%p3952_p5)
}
  0xc6   : > { %3518 = dma.hbm_to_vmem [thread:$0]  (!%p4358_p12), %s5072_s26, 128, %s4463_s20, [#allocation3]  }
  0xc7   : > { %s4194_s29 = smov [#allocation7]   ;;  %s3956_s2 = scalar_lea.hbm %s5018_s7, 2048 }
  0xc8   : > { %s499_s18 = sshll.u32 %s4194_s29, 4  ;;  %p3957_p6 = scmp.ne.s32.totalorder %s5018_s7, %s3956_s2  ;;  %s500_s18 = int_to_ptr.vmem [resolvable:$true] %s499_s18 }
  0xc9   : > { %p3963_p1 = scmp.lt.u32.totalorder %s3956_s2, %s5018_s7 }
  0xca   : > { %p3959_p9 = pnand %p3957_p6, %p4372_p0 }
  0xcc   : > { %p3960_p10 = pneg %p3959_p9 }
  0xce   : > { %p3965_p2 = pnand %p3963_p1, %p3960_p10 }
  0xd0   : > { %3968 = shalt.err (!%p3965_p2)
}
  0xd1   : > { %s3969_s20 = scalar_lea.vmem %s500_s18, 2048  ;;  %p3977_p8 = scmp.lt.s32.totalorder %s500_s18, %s500_s18 }
  0xd2   : > { %p3970_p3 = scmp.ne.s32.totalorder %s500_s18, %s3969_s20  ;;  %p3978_p11 = scmp.lt.s32.totalorder %s3969_s20, %s3969_s20 }
  0xd4   : > { %p3972_p4 = pnand %p3970_p3, %p4372_p0  ;;  %p3979_p13 = por %p3978_p11, %p3977_p8 }
  0xd6   : > { %p3973_p7 = pneg %p3972_p4 }
  0xd8   : > { %p3980_p5 = pnand %p3979_p13, %p3973_p7 }
  0xda   : > { %3983 = shalt.err (!%p3980_p5)
}
  0xdb   : > { %s4195_s30 = smov 64   ;;  %s4196_s27 = smov 4  }
  0xdc   : > { %3524 = dma.hbm_to_vmem [thread:$0]  (!%p4358_p12), %s5018_s7, 2048, %s500_s18, [#allocation6], %s4195_s30, %s4195_s30, %s4196_s27  }
  0xdd   : > { %s4197_s21 = smov [#allocation10]   ;;  %s4198_s2 = smov [#allocation13]  }
  0xde   : > { %s531_s22 = sshll.u32 %s4197_s21, 4  ;;  %s557_s28 = sshll.u32 %s4198_s2, 4  ;;  %s532_s22 = int_to_ptr.vmem [resolvable:$true] %s531_s22  ;;  %s558_s28 = int_to_ptr.vmem [resolvable:$true] %s557_s28 }
  0xdf   : > { %s3984_s5 = scalar_lea.hbm %s5022_s11, 2048 }
  0xe0   : > { %p3985_p6 = scmp.ne.s32.totalorder %s5022_s11, %s3984_s5  ;;  %p3991_p1 = scmp.lt.u32.totalorder %s3984_s5, %s5022_s11 }
  0xe2   : > { %p3987_p9 = pnand %p3985_p6, %p4372_p0 }
  0xe4   : > { %p3988_p10 = pneg %p3987_p9 }
  0xe6   : > { %p3993_p2 = pnand %p3991_p1, %p3988_p10 }
  0xe8   : > { %3996 = shalt.err (!%p3993_p2)
}
  0xe9   : > { %s3997_s18 = scalar_lea.vmem %s532_s22, 2048  ;;  %p4005_p8 = scmp.lt.s32.totalorder %s532_s22, %s532_s22 }
  0xea   : > { %p3998_p3 = scmp.ne.s32.totalorder %s532_s22, %s3997_s18  ;;  %p4006_p11 = scmp.lt.s32.totalorder %s3997_s18, %s3997_s18 }
  0xec   : > { %p4000_p4 = pnand %p3998_p3, %p4372_p0  ;;  %p4007_p13 = por %p4006_p11, %p4005_p8 }
  0xee   : > { %p4001_p7 = pneg %p4000_p4 }
  0xf0   : > { %p4008_p5 = pnand %p4007_p13, %p4001_p7 }
  0xf2   : > { %4011 = shalt.err (!%p4008_p5)
}
  0xf3   : > { %3530 = dma.hbm_to_vmem [thread:$0]  (!%p4358_p12), %s5022_s11, 2048, %s532_s22, [#allocation9], %s4195_s30, %s4195_s30, %s4196_s27  }
  0xf4   : > { %s4012_s29 = scalar_lea.hbm %s5024_s13, 2048 }
  0xf5   : > { %p4013_p6 = scmp.ne.s32.totalorder %s5024_s13, %s4012_s29  ;;  %p4019_p1 = scmp.lt.u32.totalorder %s4012_s29, %s5024_s13 }
  0xf7   : > { %p4015_p9 = pnand %p4013_p6, %p4372_p0 }
  0xf9   : > { %p4016_p10 = pneg %p4015_p9 }
  0xfb   : > { %p4021_p2 = pnand %p4019_p1, %p4016_p10 }
  0xfd   : > { %4024 = shalt.err (!%p4021_p2)
}
  0xfe   : > { %s4025_s5 = scalar_lea.vmem %s558_s28, 2048  ;;  %p4033_p8 = scmp.lt.s32.totalorder %s558_s28, %s558_s28 }
  0xff   : > { %p4026_p3 = scmp.ne.s32.totalorder %s558_s28, %s4025_s5  ;;  %p4034_p11 = scmp.lt.s32.totalorder %s4025_s5, %s4025_s5 }
 0x101   : > { %p4028_p4 = pnand %p4026_p3, %p4372_p0  ;;  %p4035_p13 = por %p4034_p11, %p4033_p8 }
 0x103   : > { %p4029_p7 = pneg %p4028_p4 }
 0x105   : > { %p4036_p5 = pnand %p4035_p13, %p4029_p7 }
 0x107   : > { %4039 = shalt.err (!%p4036_p5)
}
 0x108   : > { %3536 = dma.hbm_to_vmem [thread:$0]  (!%p4358_p12), %s5024_s13, 2048, %s558_s28, [#allocation12], %s4195_s30, %s4195_s30, %s4196_s27  }
 0x109   : > { %s4199_s18 = smov [#allocation16]   ;;  %s4200_s12 = smov [#allocation19]  }
 0x10a   : > { %s584_s10 = sshll.u32 %s4199_s18, 4  ;;  %s605_s14 = sshll.u32 %s4200_s12, 4  ;;  %s585_s10 = int_to_ptr.vmem [resolvable:$true] %s584_s10  ;;  %s606_s14 = int_to_ptr.vmem [resolvable:$true] %s605_s14 }
 0x10b   : > { %s4040_s21 = scalar_lea.hbm %s5026_s15, 16 }
 0x10c   : > { %p4041_p6 = scmp.ne.s32.totalorder %s5026_s15, %s4040_s21  ;;  %p4047_p1 = scmp.lt.u32.totalorder %s4040_s21, %s5026_s15 }
 0x10e   : > { %p4043_p9 = pnand %p4041_p6, %p4372_p0 }
 0x110   : > { %p4044_p10 = pneg %p4043_p9 }
 0x112   : > { %p4049_p2 = pnand %p4047_p1, %p4044_p10 }
 0x114   : > { %4052 = shalt.err (!%p4049_p2)
}
 0x115   : > { %s4053_s28 = scalar_lea.vmem %s585_s10, 16  ;;  %s4060_s22 = scalar_lea.vmem %s585_s10, 32 }
 0x116   : > { %p4054_p3 = scmp.ne.s32.totalorder %s585_s10, %s4053_s28  ;;  %p4061_p8 = scmp.lt.s32.totalorder %s585_s10, %s585_s10 }
 0x117   : > { %p4062_p11 = scmp.lt.s32.totalorder %s4060_s22, %s4053_s28 }
 0x118   : > { %p4056_p4 = pnand %p4054_p3, %p4372_p0 }
 0x119   : > { %p4063_p13 = por %p4062_p11, %p4061_p8 }
 0x11a   : > { %p4057_p7 = pneg %p4056_p4 }
 0x11c   : > { %p4064_p5 = pnand %p4063_p13, %p4057_p7 }
 0x11e   : > { %4067 = shalt.err (!%p4064_p5)
}
 0x11f   : > { %3542 = dma.hbm_to_vmem [thread:$0]  (!%p4358_p12), %s5026_s15, 16, %s585_s10, [#allocation15]  }
 0x120   : > { %s4068_s29 = scalar_lea.hbm %s5028_s17, 1024 }
 0x121   : > { %p4069_p6 = scmp.ne.s32.totalorder %s5028_s17, %s4068_s29  ;;  %p4075_p1 = scmp.lt.u32.totalorder %s4068_s29, %s5028_s17 }
 0x123   : > { %p4071_p9 = pnand %p4069_p6, %p4372_p0 }
 0x125   : > { %p4072_p10 = pneg %p4071_p9 }
 0x127   : > { %p4077_p2 = pnand %p4075_p1, %p4072_p10 }
 0x129   : > { %4080 = shalt.err (!%p4077_p2)
}
 0x12a   : > { %s4081_s5 = scalar_lea.vmem %s606_s14, 1024  ;;  %p4089_p8 = scmp.lt.s32.totalorder %s606_s14, %s606_s14 }
 0x12b   : > { %p4082_p3 = scmp.ne.s32.totalorder %s606_s14, %s4081_s5  ;;  %p4090_p11 = scmp.lt.s32.totalorder %s4081_s5, %s4081_s5 }
 0x12d   : > { %p4084_p4 = pnand %p4082_p3, %p4372_p0  ;;  %p4091_p13 = por %p4090_p11, %p4089_p8 }
 0x12f   : > { %p4085_p7 = pneg %p4084_p4 }
 0x131   : > { %p4092_p5 = pnand %p4091_p13, %p4085_p7 }
 0x133   : > { %4095 = shalt.err (!%p4092_p5)
}
 0x134   : > { %3548 = dma.hbm_to_vmem [thread:$0]  (!%p4358_p12), %s5028_s17, 1024, %s606_s14, [#allocation18], %s4195_s30, %s4195_s30, %s4196_s27  }
 0x135   : > { %p5073_p6 = scmp.ne.s32.totalorder %s5065_s24, 0 }
 0x136   : > { %p5074_p0 = scmp.eq.s32.totalorder (!%p5073_p6), %s4322_s0, 0 }
 0x137   : > { %628 = sbr.rel (%p5073_p6) target bundleno = 5812 (0x16b4), region = 92 }
 0x13e   : > { %4141 = dma.done.wait (%p5074_p0), [#allocation3], 128   ;;  %p5075_p9 = pmov %p5074_p0 }
 0x13f   : > { %p5076_p10 = pmov %p5074_p0 }
 0x140   : > { %4143 = vsyncadd (%p5075_p9), [#allocation3], 4294967168 }
 0x141   : > { %4145 = dma.done.wait (%p5076_p10), [#allocation6], 8192   ;;  %p5077_p1 = pmov %p5074_p0 }
 0x142   : > { %p5078_p2 = pmov %p5074_p0 }
 0x143   : > { %4147 = vsyncadd (%p5077_p1), [#allocation6], 4294959104 }
 0x144   : > { %4149 = dma.done.wait (%p5078_p2), [#allocation9], 2080   ;;  %p5079_p12 = pmov %p5074_p0 }
 0x145   : > { %p5080_p3 = pmov %p5074_p0 }
 0x146   : > { %4151 = vsyncadd (%p5079_p12), [#allocation9], 4294965216 }
 0x147   : > { %4153 = dma.done.wait (%p5080_p3), [#allocation12], 2080   ;;  %p5081_p4 = pmov %p5074_p0 }
 0x148   : > { %p5082_p7 = pmov %p5074_p0 }
 0x149   : > { %4155 = vsyncadd (%p5081_p4), [#allocation12], 4294965216 }
 0x14a   : > { %4157 = dma.done.wait (%p5082_p7), [#allocation15], 48   ;;  %p5083_p8 = pmov %p5074_p0 }
 0x14b   : > { %p5084_p11 = pmov %p5074_p0 }
 0x14c   : > { %4159 = vsyncadd (%p5083_p8), [#allocation15], 4294967248 }
 0x14d   : > { %4161 = dma.done.wait (%p5084_p11), [#allocation18], 1040   ;;  %p5085_p13 = pmov %p5074_p0 }
 0x14e   : > { %p721_p5 = scmp.lt.s32.totalorder %s4322_s0, 1  ;;  %v4201_v0 = vmov 0   ;;  %v4202_v1 = vmov 0.0   ;;  %s5086_s27 = sld [smem:[#allocation36_spill]]  ;;  %vm4203_vm0 = vmmov 0   ;;  %v727_v11 = vlaneseq  ;;  %v751_v15 = vld [vmem:[#allocation2] sm:$0xff] }
 0x14f   : > { %4163 = vsyncadd (%p5085_p13), [#allocation18], 4294966256  ;;  %3629 = vset.pattern.permute.xlu0 %v4201_v0  ;;  %3213 = vmatprep.subr.bf16.mxu0 %v4202_v1  ;;  %s5087_s18 = sld [smem:[#allocation37_spill]]  ;;  %v4204_v14 = vmov 1.0|1.0   ;;  %vm1258_vm9 = vcmask 1043456  }
 0x150   : > { %s722_s24 = scalar_select %p721_p5, %s4322_s0, 1  ;;  %1088 = vmatprep.mubr.bf16.mxu1 %v4201_v0  ;;  %3229 = vmatprep.mubr.msk.bf16.mxu0 %vm4203_vm0, %v4202_v1  ;;  %v4680_v12 = vand.u32 127, %v727_v11  ;;  %v3638_v22 = vld [vmem:[#allocation5 + $0x4] ss:$12 sps:$4 sm:$0xff]   ;;  %v3640_v23 = vld [vmem:[#allocation5] ss:$12 sps:$4 sm:$0xff]  }
 0x151   : > { %v3641_v24 = vld [vmem:[#allocation5 + $0x8] ss:$12 sps:$4 sm:$0xff]   ;;  %1056 = vmatprep.subr.bf16.mxu1 %v3638_v22  ;;  %v3645_v26 = vld [vmem:[#allocation5 + $0x20] ss:$12 sps:$4 sm:$0xff]   ;;  %v3644_v27 = vld [vmem:[#allocation5 + $0x18] ss:$12 sps:$4 sm:$0xff]  }
 0x152   : > { %s2951_s19 = sshll.u32 %s722_s24, 3  ;;  %vm847_vm3 = vcmp.lt.s32.totalorder %v4680_v12, 32  ;;  %v3642_v25 = vld [vmem:[#allocation5 + $0x1c] ss:$12 sps:$4 sm:$0xff]   ;;  %1057 = vmatpush1.bf16.msra.mxu1 %v3640_v23  ;;  %v3646_v28 = vld [vmem:[#allocation5 + $0x34] ss:$12 sps:$4 sm:$0xff]  }
 0x153   : > { %1058 = vmatprep.subr.bf16.mxu1 %v3642_v25  ;;  %v3648_v34 = vld [vmem:[#allocation5 + $0x30] ss:$12 sps:$4 sm:$0xff]   ;;  %v3649_v35 = vld [vmem:[#allocation5 + $0x38] ss:$12 sps:$4 sm:$0xff]   ;;  %v3652_v37 = vld [vmem:[#allocation5 + $0x48] ss:$12 sps:$4 sm:$0xff]  }
 0x154   : > { %s724_s14 = scalar_lea.vmem %s5086_s27, %s2951_s19  ;;  %v3650_v36 = vld [vmem:[#allocation5 + $0x4c] ss:$12 sps:$4 sm:$0xff]   ;;  %v3653_v38 = vld [vmem:[#allocation5 + $0x50] ss:$12 sps:$4 sm:$0xff]   ;;  %v3657_v41 = vld [vmem:[#allocation5 + $0x68] ss:$12 sps:$4 sm:$0xff]  }
 0x155   : > { %v726_v2 = vld [vmem:[%s724_s14] sm:$0xff]  ;;  %v3631_v4 = vld [vmem:[%s5087_s18 + $0x8] sm:$0xff]   ;;  %v3632_v5 = vld [vmem:[%s5087_s18 + $0x10] sm:$0xff]   ;;  %v4714_v61 = vshrl.u32 %v727_v11, 7  ;;  %vm846_vm4 = vcmp.ge.s32.totalorder %v4680_v12, 16  ;;  %vm844_vm5 = vcmp.lt.s32.totalorder %v4680_v12, 16 }
 0x156   : > { %730 = vperm.xlu0 %3629, %v726_v2   ;;  %v3630_v3 = vld [vmem:[%s5087_s18] sm:$0xff]   ;;  %v3633_v6 = vld [vmem:[%s5087_s18 + $0x18] sm:$0xff]   ;;  %v3635_v8 = vld [vmem:[%s5087_s18 + $0x28] sm:$0xff]   ;;  %1059 = vmatpush1.bf16.msra.mxu1 %v3644_v27  ;;  %vm1182_vm11 = vcmask 64512   ;;  %s5092_s1 = sld [smem:[#allocation40_spill]]  ;;  %s5093_s20 = sld [smem:[#allocation29_spill]] }
 0x157   : > { %3214 = vmatpush3.bf16.msra.mxu0 %v3630_v3  ;;  %v3634_v7 = vld [vmem:[%s5087_s18 + $0x20] sm:$0xff]   ;;  %v3636_v9 = vld [vmem:[%s5087_s18 + $0x30] sm:$0xff]   ;;  %v3637_v10 = vld [vmem:[%s5087_s18 + $0x38] sm:$0xff]   ;;  %1060 = vmatprep.subr.bf16.mxu1 %v3646_v28  ;;  %v919_v62 = vsub.s32 1, %v4714_v61  ;;  %v915_v3 = vsub.s32 0, %v4714_v61  ;;  %vm842_vm10 = vcmp.le.s32.totalorder %v4680_v12, %v4714_v61  ;;  %s5094_s12 = sld [smem:[#allocation34_spill]] }
 0x158   : > { %3215 = vmatprep.subr.bf16.mxu0 %v4202_v1  ;;  %v3654_v39 = vld [vmem:[#allocation5 + $0x64] ss:$12 sps:$4 sm:$0xff]   ;;  %v3656_v40 = vld [vmem:[#allocation5 + $0x60] ss:$12 sps:$4 sm:$0xff]   ;;  %v3658_v42 = vld [vmem:[#allocation5 + $0x7c] ss:$12 sps:$4 sm:$0xff]  }
 0x159   : > { %v3660_v43 = vld [vmem:[#allocation5 + $0x78] ss:$12 sps:$4 sm:$0xff]   ;;  %v3661_v44 = vld [vmem:[#allocation5 + $0x80] ss:$12 sps:$4 sm:$0xff]   ;;  %v3664_v46 = vld [vmem:[#allocation5 + $0x90] ss:$12 sps:$4 sm:$0xff]  }
 0x15a   : > { %1061 = vmatpush1.bf16.msra.mxu1 %v3648_v34  ;;  %v3662_v45 = vld [vmem:[#allocation5 + $0x94] ss:$12 sps:$4 sm:$0xff]   ;;  %v3665_v47 = vld [vmem:[#allocation5 + $0x98] ss:$12 sps:$4 sm:$0xff]   ;;  %v3669_v50 = vld [vmem:[#allocation5 + $0xb0] ss:$12 sps:$4 sm:$0xff]  }
 0x15b   : > { %3216 = vmatpush3.bf16.msra.mxu0 %v3631_v4  ;;  %1062 = vmatprep.subr.bf16.mxu1 %v3650_v36  ;;  %v3666_v48 = vld [vmem:[#allocation5 + $0xac] ss:$12 sps:$4 sm:$0xff]   ;;  %v3668_v49 = vld [vmem:[#allocation5 + $0xa8] ss:$12 sps:$4 sm:$0xff]   ;;  %vm4736_vm6 = vmpackc.low %vm844_vm5, %vm844_vm5  ;;  %s3104_s9 = sshll.u32 %s4322_s0, 7  ;;  %s5095_s28 = sld [smem:[#allocation44_spill]] }
 0x15c   : > { %3217 = vmatprep.subr.bf16.mxu0 %v4202_v1  ;;  %v2962_v55 = vld [vmem:[%s5014_s3] ss:$0 sm:$0xff]  ;;  %vm4742_vm7 = vmand %vm846_vm4, %vm847_vm3  ;;  %s718_s23 = sand.u32 1, %s5093_s20   ;;  %s4205_s0 = smov [#allocation20]  }
 0x15d   : > { %v2963_v57 = vld [vmem:[%s5015_s4] ss:$0 sm:$0xff]  ;;  %vm2991_vm8 = vmpackc.low %vm4742_vm7, %vm4742_vm7  ;;  %s2950_s29 = sshll.u32 %s718_s23, 3  ;;  %s2745_s25 = scalar_lea.sflag [#allocation4], %s718_s23 }
 0x15e   : > { %1063 = vmatpush1.bf16.msra.mxu1 %v3652_v37  ;;  %v910_v63 = vld [vmem:[%s5017_s6] sm:$0x7]  ;;  %s720_s21 = scalar_lea.vmem [#allocation20], %s2950_s29  ;;  %p5097_p0 = scmp.ne.s32.totalorder %s5094_s12, 0 }
 0x15f   : > { %3218 = vmatpush3.bf16.msra.mxu0 %v3632_v5  ;;  %1064 = vmatprep.subr.bf16.mxu1 %v3654_v39  ;;  %v920_v2 = vrot.slane %v910_v63, %v919_v62  ;;  %s2758_s2 = sshll.u32 %s720_s21, 4  ;;  %s4100_s27 = sshll.u32 %s4205_s0, 4  ;;  %s4966_s2 = int_to_ptr.vmem [resolvable:$true] %s2758_s2  ;;  %s4101_s27 = int_to_ptr.vmem [resolvable:$false] %s4100_s27 }
 0x160   : > { %3219 = vmatprep.subr.bf16.mxu0 %v4202_v1  ;;  %s4096_s30 = scalar_lea.vmem %s4966_s2, 128  ;;  %s4102_s14 = scalar_lea.vmem %s4101_s27, 256 }
 0x161   : > { %s5096_s24 = smov %s5095_s28  ;;  %s4971_s19 = scalar_lea.hbm %s5095_s28, %s3104_s9 }
 0x162   : > { %1065 = vmatpush1.bf16.msra.mxu1 %v3656_v40  ;;  %p4097_p6 = scmp.ne.s32.totalorder %s4966_s2, %s4096_s30  ;;  %p4103_p1 = scmp.lt.s32.totalorder %s4966_s2, %s4101_s27 }
 0x163   : > { %3220 = vmatpush3.bf16.msra.mxu0 %v3633_v6  ;;  %1066 = vmatprep.subr.bf16.mxu1 %v3658_v42  ;;  %p4104_p2 = scmp.lt.s32.totalorder %s4102_s14, %s4096_s30 }
 0x164   : > { %3221 = vmatprep.subr.bf16.mxu0 %v4202_v1  ;;  %p4098_p9 = pnand %p4097_p6, %p5097_p0 }
 0x165   : > { %p4105_p12 = por %p4104_p2, %p4103_p1 }
 0x166   : > { %1067 = vmatpush1.bf16.msra.mxu1 %v3660_v43  ;;  %p4099_p10 = pneg %p4098_p9 }
 0x167   : > { %3222 = vmatpush3.bf16.msra.mxu0 %v3634_v7  ;;  %1068 = vmatprep.subr.bf16.mxu1 %v3662_v45 }
 0x168   : > { %3223 = vmatprep.subr.bf16.mxu0 %v4202_v1  ;;  %p4106_p3 = pnand %p4105_p12, %p4099_p10 }
 0x16a   : > { %1069 = vmatpush1.bf16.msra.mxu1 %v3664_v46 }
 0x16b   : > { %3224 = vmatpush3.bf16.msra.mxu0 %v3635_v8  ;;  %1070 = vmatprep.subr.bf16.mxu1 %v3666_v48  ;;  %v923_v8 = vsub.s32 2, %v4714_v61  ;;  %v3726_v61 = vld [vmem:[#allocation7 + $0x40] sm:$0xff]  }
 0x16c   : > { %3225 = vmatprep.subr.bf16.mxu0 %v4202_v1 }
 0x16e   : > { %1071 = vmatpush1.bf16.msra.mxu1 %v3668_v49 }
 0x16f   : > { %3226 = vmatpush3.bf16.msra.mxu0 %v3636_v9  ;;  %3253 = vmatprep.subr.bf16.mxu1 %v4202_v1 }
 0x170   : > { %3227 = vmatprep.subr.bf16.mxu0 %v4202_v1 }
 0x173   : > { %3228 = vmatpush3.bf16.msra.mxu0 %v3637_v10 }
 0x174   : > { %3233 = vmatprep.subr.bf16.mxu0 %v4202_v1 }
 0x1d5   : > { %v731_v13 = vpop.permute.xlu0 %730 }
 0x1d6   : > { %vm732_vm1 = vcmp.eq.s32.totalorder %v4680_v12, %v731_v13  ;;  %v916_v13 = vrot.slane %v910_v63, %v915_v3  ;;  %v3756_v12 = vld [vmem:[#allocation19 + $0x30] sm:$0xff]  }
 0x1d7   : > { %vm2960_vm2 = vmpackc.low %vm732_vm1, %vm732_vm1 }
 0x1d8   : > { %3230 = vmatmul.mubr.msk.bf16.vlgmr.msra.gmra.mrb[0].mxu0 %vm2960_vm2, %v4204_v14 }
 0x1d9   : > { %3249 = vmatprep.mubr.msk.bf16.mxu0 %vm4203_vm0, %v4202_v1  ;;  %3234 = vmatpush3.bf16.msra.mxu0 %v3641_v24 }
 0x1da   : > { %3235 = vmatprep.subr.bf16.mxu0 %v4202_v1 }
 0x1dd   : > { %3236 = vmatpush3.bf16.msra.mxu0 %v3645_v26 }
 0x1de   : > { %3237 = vmatprep.subr.bf16.mxu0 %v4202_v1 }
 0x1e1   : > { %3238 = vmatpush3.bf16.msra.mxu0 %v3649_v35 }
 0x1e2   : > { %3239 = vmatprep.subr.bf16.mxu0 %v4202_v1 }
 0x1e5   : > { %3240 = vmatpush3.bf16.msra.mxu0 %v3653_v38 }
 0x1e6   : > { %3241 = vmatprep.subr.bf16.mxu0 %v4202_v1 }
 0x1e9   : > { %3242 = vmatpush3.bf16.msra.mxu0 %v3657_v41 }
 0x1ea   : > { %3243 = vmatprep.subr.bf16.mxu0 %v4202_v1 }
 0x1ed   : > { %3244 = vmatpush3.bf16.msra.mxu0 %v3661_v44 }
 0x1ee   : > { %3245 = vmatprep.subr.bf16.mxu0 %v4202_v1 }
 0x1f1   : > { %3246 = vmatpush3.bf16.msra.mxu0 %v3665_v47 }
 0x1f2   : > { %3247 = vmatprep.subr.bf16.mxu0 %v4202_v1 }
 0x1f5   : > { %3248 = vmatpush3.bf16.msra.mxu0 %v3669_v50 }
 0x1f6   : > { %3277 = vmatprep.subr.bf16.mxu0 %v4202_v1 }
 0x2ab   : > { %v834_v16 = vpop.f32.mrb[0].mxu0 }
 0x2ac   : > { %v4686_v17 = vadd.f32 %v834_v16, %v751_v15  ;;  %v3231_v18 = vpop.f32.mrb[1].mxu0 }
 0x2ad   : > { %v837_v19 = vpop.f32.mrb[2].mxu0  ;;  %v924_v18 = vrot.slane %v910_v63, %v923_v8 }
 0x2ae   : > { %v3232_v20 = vpop.f32.mrb[3].mxu0  ;;  %v851_v21 = vsel %vm847_vm3, %v4686_v17, 0.0 }
 0x2af   : > { %852 = vadd.xlane.f32.xlu0 %v851_v21 }
 0x33c   : > { %v853_v29 = vpop.xlane.xlu0 %852 }
 0x33d   : > { %v854_v30 = vmul.f32 0.03125, %v853_v29 }
 0x33f   : > { %v855_v31 = vsub.f32 %v4686_v17, %v854_v30 }
 0x341   : > { %v856_v32 = vsel %vm847_vm3, %v855_v31, 0.0 }
 0x342   : > { %v857_v33 = vmul.f32 %v856_v32, %v856_v32 }
 0x344   : > { %858 = vadd.xlane.f32.xlu1 %v857_v33 }
 0x3d1   : > { %v859_v51 = vpop.xlane.xlu1 %858 }
 0x3d2   : > { %v860_v52 = vmul.f32 0.03125, %v859_v51  ;;  %v3670_v51 = vld [vmem:[#allocation7] sm:$0xff]  }
 0x3d4   : > { %v861_v53 = vadd.f32 1e-05, %v860_v52  ;;  %v3671_v52 = vld [vmem:[#allocation7 + $0x8] sm:$0xff]  }
 0x3d6   : > { %3758 = vrsqrt.f32 %v861_v53  ;;  %v3672_v53 = vld [vmem:[#allocation7 + $0x10] sm:$0xff]  }
 0x3e0   : > { %v3759_v54 = vpop.eup %3758 }
 0x3e1   : > { %v863_v56 = vmul.f32 %v3759_v54, %v856_v32  ;;  %v3673_v54 = vld [vmem:[#allocation7 + $0x18] sm:$0xff]  }
 0x3e3   : > { %v870_v58 = vmul.f32 %v2962_v55, %v863_v56  ;;  %v3674_v55 = vld [vmem:[#allocation7 + $0x20] sm:$0xff]   ;;  %v3675_v56 = vld [vmem:[#allocation7 + $0x28] sm:$0xff]  }
 0x3e5   : > { %v877_v59 = vadd.f32 %v2963_v57, %v870_v58  ;;  %v3676_v57 = vld [vmem:[#allocation7 + $0x30] sm:$0xff]  }
 0x3e7   : > { %v911_v60 = vpack.c.bf16 %v877_v59, %v877_v59 }
 0x3e9   : > { %1089 = vmatmul.mubr.bf16.vlgmr.msra.gmra.mrb[0].mxu1 %v911_v60  ;;  %3250 = vmatmul.mubr.bf16.vlgmr.msra.gmra.mrb[4].mxu0 %v911_v60 }
 0x3ea   : > { %3255 = vmatprep.mubr.msk.bf16.mxu1 %vm4203_vm0, %v4202_v1  ;;  %3293 = vmatprep.mubr.msk.bf16.mxu0 %vm4203_vm0, %v4202_v1 }
 0x3eb   : > { %3278 = vmatpush3.bf16.msra.mxu0 %v3670_v51 }
 0x3ec   : > { %3279 = vmatprep.subr.bf16.mxu0 %v4202_v1 }
 0x3ef   : > { %3280 = vmatpush3.bf16.msra.mxu0 %v3671_v52  ;;  %v3687_v52 = vld [vmem:[#allocation13 + $0x8] sm:$0xff]  }
 0x3f0   : > { %3281 = vmatprep.subr.bf16.mxu0 %v4202_v1 }
 0x3f3   : > { %3282 = vmatpush3.bf16.msra.mxu0 %v3672_v53  ;;  %v3688_v53 = vld [vmem:[#allocation13 + $0x10] sm:$0xff]  }
 0x3f4   : > { %3283 = vmatprep.subr.bf16.mxu0 %v4202_v1 }
 0x3f7   : > { %3284 = vmatpush3.bf16.msra.mxu0 %v3673_v54  ;;  %v3689_v54 = vld [vmem:[#allocation13 + $0x18] sm:$0xff]  }
 0x3f8   : > { %3285 = vmatprep.subr.bf16.mxu0 %v4202_v1 }
 0x3fb   : > { %3286 = vmatpush3.bf16.msra.mxu0 %v3674_v55  ;;  %v3690_v55 = vld [vmem:[#allocation13 + $0x20] sm:$0xff]  }
 0x3fc   : > { %3287 = vmatprep.subr.bf16.mxu0 %v4202_v1 }
 0x3ff   : > { %3288 = vmatpush3.bf16.msra.mxu0 %v3675_v56  ;;  %v3691_v56 = vld [vmem:[#allocation13 + $0x28] sm:$0xff]  }
 0x400   : > { %3289 = vmatprep.subr.bf16.mxu0 %v4202_v1 }
 0x403   : > { %3290 = vmatpush3.bf16.msra.mxu0 %v3676_v57  ;;  %v3692_v57 = vld [vmem:[#allocation13 + $0x30] sm:$0xff]  }
 0x404   : > { %3291 = vmatprep.subr.bf16.mxu0 %v4202_v1 }
 0x4bc   : > { %v1090_v4 = vpop.f32.mrb[0].mxu1  ;;  %v1131_v5 = vpop.f32.mrb[4].mxu0 }
 0x4bd   : > { %v1092_v6 = vpop.f32.mrb[1].mxu1  ;;  %v3251_v7 = vpop.f32.mrb[5].mxu0  ;;  %v1091_v19 = vadd.f32 %v1090_v4, %v916_v13  ;;  %v4731_v20 = vadd.f32 %v1131_v5, %v924_v18 }
 0x4be   : > { %v1093_v9 = vadd.f32 %v1092_v6, %v920_v2  ;;  %v1094_v10 = vpop.f32.mrb[2].mxu1  ;;  %v1134_v11 = vpop.f32.mrb[6].mxu0 }
 0x4bf   : > { %v1095_v14 = vpop.f32.mrb[3].mxu1  ;;  %v3252_v15 = vpop.f32.mrb[7].mxu0  ;;  %v2989_v22 = vpack.c.bf16 %v1091_v19, %v1091_v19  ;;  %v1252_v24 = vsel %vm4742_vm7, %v4731_v20, 0.0  ;;  %v1194_v60 = vsel %vm844_vm5, %v4731_v20, 0.0  ;;  %v3677_v11 = vld [vmem:[#allocation7 + $0x38] sm:$0xff]  }
 0x4c0   : > { %v1139_v16 = vpack.c.bf16 %v1093_v9, %v1093_v9  ;;  %v1254_v25 = vpack.c.bf16 %v1252_v24, %v1252_v24  ;;  %v1196_v2 = vpack.c.bf16 %v1194_v60, %v1194_v60  ;;  %3292 = vmatpush3.bf16.msra.mxu0 %v3677_v11  ;;  %v2996_v19 = vld [vmem:[%s5019_s8] ss:$0 sm:$0xff] }
 0x4c1   : > { %3317 = vmatprep.subr.bf16.mxu0 %v4202_v1 }
 0x4c2   : > { %3254 = vmatpush3.bf16.xpose.msra.mxu1 %v1139_v16  ;;  %v1260_v26 = vsel %vm1258_vm9, %v1254_v25, 0  ;;  %v1306_v6 = vsel %vm1258_vm9, %v1196_v2, 0 }
 0x4c3   : > { %3259 = vmatprep.subr.bf16.mxu1 %v4202_v1 }
 0x4c9   : > { %3256 = vmatmul.mubr.msk.bf16.vlgmr.msra.gmra.mrb[4].mxu1 %vm4736_vm6, %v2989_v22 }
 0x4ca   : > { %3260 = vmatpush3.bf16.xpose.msra.mxu1 %v1139_v16  ;;  %3261 = vmatprep.mubr.msk.bf16.mxu1 %vm4203_vm0, %v4202_v1 }
 0x4cb   : > { %3265 = vmatprep.subr.bf16.mxu1 %v4202_v1 }
 0x4d1   : > { %3262 = vmatmul.mubr.msk.bf16.vlgmr.msra.gmra.mrb[8].mxu1 %vm2991_vm8, %v2989_v22 }
 0x4d2   : > { %3266 = vmatpush3.bf16.msra.mxu1 %v1260_v26  ;;  %3267 = vmatprep.mubr.msk.bf16.mxu1 %vm4203_vm0, %v4202_v1 }
 0x4d3   : > { %3271 = vmatprep.subr.bf16.mxu1 %v4202_v1 }
 0x59c   : > { %v1174_v27 = vpop.f32.mrb[4].mxu1 }
 0x59d   : > { %v3257_v28 = vpop.f32.mrb[5].mxu1  ;;  %v1180_v32 = vmul.f32 0.25, %v1174_v27 }
 0x59e   : > { %v1177_v29 = vpop.f32.mrb[6].mxu1 }
 0x59f   : > { %v3258_v30 = vpop.f32.mrb[7].mxu1  ;;  %v1181_v39 = vsel %vm842_vm10, %v1180_v32, -1e+30  ;;  %v3678_v29 = vld [vmem:[#allocation10] sm:$0xff]  }
 0x5a0   : > { %v1183_v40 = vsel %vm1182_vm11, %v1181_v39, -inf  ;;  %v3679_v30 = vld [vmem:[#allocation10 + $0x8] sm:$0xff]  }
 0x5a4   : > { %v1233_v31 = vpop.f32.mrb[8].mxu1 }
 0x5a5   : > { %v1239_v33 = vmul.f32 0.25, %v1233_v31  ;;  %v3263_v34 = vpop.f32.mrb[9].mxu1 }
 0x5a6   : > { %v1236_v35 = vpop.f32.mrb[10].mxu1 }
 0x5a7   : > { %v3264_v36 = vpop.f32.mrb[11].mxu1  ;;  %v1240_v37 = vsel %vm842_vm10, %v1239_v33, -1e+30  ;;  %v3680_v35 = vld [vmem:[#allocation10 + $0x10] sm:$0xff]  }
 0x5a8   : > { %v1241_v38 = vsel %vm1182_vm11, %v1240_v37, -inf  ;;  %v3681_v36 = vld [vmem:[#allocation10 + $0x18] sm:$0xff]  }
 0x5a9   : > { %1242 = vmax.xlane.f32.xlu1 %v1241_v38  ;;  %v3683_v38 = vld [vmem:[#allocation10 + $0x28] sm:$0xff]  }
 0x5ad   : > { %1184 = vmax.xlane.f32.xlu1 %v1183_v40  ;;  %v3685_v40 = vld [vmem:[#allocation10 + $0x38] sm:$0xff]  }
 0x636   : > { %v1243_v41 = vpop.xlane.xlu1 %1242 }
 0x637   : > { %v1244_v42 = vsub.f32 %v1240_v37, %v1243_v41  ;;  %v3682_v37 = vld [vmem:[#allocation10 + $0x20] sm:$0xff]  }
 0x638   : > { %v3686_v41 = vld [vmem:[#allocation13] sm:$0xff]  }
 0x639   : > { %v1245_v43 = vmul.f32 1.442695, %v1244_v42 }
 0x63a   : > { %v1185_v44 = vpop.xlane.xlu1 %1184 }
 0x63b   : > { %3760 = vpow2.f32 %v1245_v43  ;;  %v1186_v45 = vsub.f32 %v1181_v39, %v1185_v44  ;;  %v3684_v39 = vld [vmem:[#allocation10 + $0x30] sm:$0xff]  }
 0x63d   : > { %v1187_v46 = vmul.f32 1.442695, %v1186_v45 }
 0x63f   : > { %3762 = vpow2.f32 %v1187_v46  ;;  %v3005_v46 = vld [vmem:[%s5092_s1] ss:$0 sm:$0xff] }
 0x645   : > { %v3761_v47 = vpop.eup %3760 }
 0x646   : > { %v1247_v48 = vsel %vm1182_vm11, %v3761_v47, 0.0 }
 0x647   : > { %1248 = vadd.xlane.f32.xlu1 %v1247_v48  ;;  %v3006_v48 = vld [vmem:[#allocation8] ss:$0 sm:$0xff] }
 0x649   : > { %v3763_v49 = vpop.eup %3762 }
 0x64a   : > { %v1189_v50 = vsel %vm1182_vm11, %v3763_v49, 0.0 }
 0x64b   : > { %1190 = vadd.xlane.f32.xlu1 %v1189_v50 }
 0x6d4   : > { %v1249_v58 = vpop.xlane.xlu1 %1248 }
 0x6d5   : > { %3764 = vrcp.f32 %v1249_v58  ;;  %v3007_v58 = vld [vmem:[#allocation11] ss:$0 sm:$0xff] }
 0x6d8   : > { %v1191_v59 = vpop.xlane.xlu1 %1190 }
 0x6d9   : > { %3766 = vrcp.f32 %v1191_v59 }
 0x6df   : > { %v3765_v63 = vpop.eup %3764 }
 0x6e0   : > { %v1251_v4 = vmul.f32 %v3765_v63, %v3761_v47 }
 0x6e2   : > { %v1253_v5 = vpack.c.bf16 %v1251_v4, %v1251_v4 }
 0x6e3   : > { %v3767_v7 = vpop.eup %3766 }
 0x6e4   : > { %3268 = vmatmul.mubr.msk.bf16.vlgmr.msra.gmra.mrb[12].mxu1 %vm1182_vm11, %v1253_v5  ;;  %v1193_v9 = vmul.f32 %v3767_v7, %v3763_v49 }
 0x6e5   : > { %3272 = vmatpush3.bf16.msra.mxu1 %v1306_v6  ;;  %3273 = vmatprep.mubr.msk.bf16.mxu1 %vm4203_vm0, %v4202_v1 }
 0x6e6   : > { %3297 = vmatprep.subr.bf16.mxu1 %v4202_v1  ;;  %v1195_v10 = vpack.c.bf16 %v1193_v9, %v1193_v9 }
 0x6f0   : > { %3274 = vmatmul.mubr.msk.bf16.vlgmr.msra.gmra.mrb[12].mxu1 %vm1182_vm11, %v1195_v10 }
 0x6f1   : > { %3313 = vmatprep.mubr.msk.bf16.mxu1 %vm4203_vm0, %v4202_v1  ;;  %3298 = vmatpush3.bf16.msra.mxu1 %v3678_v29  ;;  %v3694_v29 = vld [vmem:[#allocation5 + $0xc0] ss:$12 sps:$4 sm:$0xff]  }
 0x6f2   : > { %3299 = vmatprep.subr.bf16.mxu1 %v4202_v1 }
 0x6f5   : > { %3300 = vmatpush3.bf16.msra.mxu1 %v3679_v30  ;;  %v3696_v30 = vld [vmem:[#allocation5 + $0xc4] ss:$12 sps:$4 sm:$0xff]  }
 0x6f6   : > { %3301 = vmatprep.subr.bf16.mxu1 %v4202_v1 }
 0x6f9   : > { %3302 = vmatpush3.bf16.msra.mxu1 %v3680_v35 }
 0x6fa   : > { %3303 = vmatprep.subr.bf16.mxu1 %v4202_v1 }
 0x6fd   : > { %3304 = vmatpush3.bf16.msra.mxu1 %v3681_v36 }
 0x6fe   : > { %3305 = vmatprep.subr.bf16.mxu1 %v4202_v1 }
 0x701   : > { %3306 = vmatpush3.bf16.msra.mxu1 %v3682_v37 }
 0x702   : > { %3307 = vmatprep.subr.bf16.mxu1 %v4202_v1 }
 0x705   : > { %3308 = vmatpush3.bf16.msra.mxu1 %v3683_v38 }
 0x706   : > { %3309 = vmatprep.subr.bf16.mxu1 %v4202_v1 }
 0x709   : > { %3310 = vmatpush3.bf16.msra.mxu1 %v3684_v39 }
 0x70a   : > { %3311 = vmatprep.subr.bf16.mxu1 %v4202_v1 }
 0x70d   : > { %3312 = vmatpush3.bf16.msra.mxu1 %v3685_v40  ;;  %v3705_v40 = vld [vmem:[#allocation5 + $0xf8] ss:$12 sps:$4 sm:$0xff]  }
 0x70e   : > { %1935 = vmatprep.subr.bf16.mxu1 %v3696_v30 }
 0x7c3   : > { %v1342_v13 = vpop.f32.mrb[12].mxu1 }
 0x7c4   : > { %v1365_v14 = vpack.c.bf16 %v1342_v13, %v1342_v13  ;;  %v3275_v15 = vpop.f32.mrb[13].mxu1 }
 0x7c5   : > { %v1345_v16 = vpop.f32.mrb[14].mxu1 }
 0x7c6   : > { %v3276_v18 = vpop.f32.mrb[15].mxu1  ;;  %3294 = vmatmul.mubr.bf16.vlgmr.msra.gmra.mrb[8].mxu0 %v1365_v14 }
 0x7c7   : > { %3333 = vmatprep.mubr.msk.bf16.mxu0 %vm4203_vm0, %v4202_v1  ;;  %3318 = vmatpush3.bf16.msra.mxu0 %v3686_v41  ;;  %v3016_v18 = vld [vmem:[#allocation14] ss:$0 sm:$0xff]  ;;  %v3708_v41 = vld [vmem:[#allocation5 + $0x10c] ss:$12 sps:$4 sm:$0xff]  }
 0x7c8   : > { %3319 = vmatprep.subr.bf16.mxu0 %v4202_v1 }
 0x7cb   : > { %3320 = vmatpush3.bf16.msra.mxu0 %v3687_v52  ;;  %v3721_v52 = vld [vmem:[#allocation5 + $0x158] ss:$12 sps:$4 sm:$0xff]  }
 0x7cc   : > { %3321 = vmatprep.subr.bf16.mxu0 %v4202_v1 }
 0x7cf   : > { %3322 = vmatpush3.bf16.msra.mxu0 %v3688_v53  ;;  %v3724_v53 = vld [vmem:[#allocation5 + $0x16c] ss:$12 sps:$4 sm:$0xff]  }
 0x7d0   : > { %3323 = vmatprep.subr.bf16.mxu0 %v4202_v1 }
 0x7d3   : > { %3324 = vmatpush3.bf16.msra.mxu0 %v3689_v54  ;;  %v3722_v54 = vld [vmem:[#allocation5 + $0x168] ss:$12 sps:$4 sm:$0xff]  }
 0x7d4   : > { %3325 = vmatprep.subr.bf16.mxu0 %v4202_v1 }
 0x7d7   : > { %3326 = vmatpush3.bf16.msra.mxu0 %v3690_v55  ;;  %v3725_v55 = vld [vmem:[#allocation5 + $0x170] ss:$12 sps:$4 sm:$0xff]  }
 0x7d8   : > { %3327 = vmatprep.subr.bf16.mxu0 %v4202_v1 }
 0x7db   : > { %3328 = vmatpush3.bf16.msra.mxu0 %v3691_v56 }
 0x7dc   : > { %3329 = vmatprep.subr.bf16.mxu0 %v4202_v1 }
 0x7df   : > { %3330 = vmatpush3.bf16.msra.mxu0 %v3692_v57 }
 0x7e0   : > { %3331 = vmatprep.subr.bf16.mxu0 %v4202_v1 }
 0x899   : > { %v1454_v20 = vpop.f32.mrb[8].mxu0 }
 0x89a   : > { %v1455_v22 = vadd.f32 %v2996_v19, %v1454_v20  ;;  %v3295_v24 = vpop.f32.mrb[9].mxu0 }
 0x89b   : > { %v1457_v25 = vpop.f32.mrb[10].mxu0 }
 0x89c   : > { %v4803_v26 = vadd.f32 %v1455_v22, %v4686_v17  ;;  %v3296_v27 = vpop.f32.mrb[11].mxu0 }
 0x89e   : > { %v1463_v28 = vsel %vm847_vm3, %v4803_v26, 0.0 }
 0x89f   : > { %1464 = vadd.xlane.f32.xlu1 %v1463_v28 }
 0x92c   : > { %v1465_v31 = vpop.xlane.xlu1 %1464 }
 0x92d   : > { %v1466_v32 = vmul.f32 0.03125, %v1465_v31  ;;  %v3697_v31 = vld [vmem:[#allocation5 + $0xc8] ss:$12 sps:$4 sm:$0xff]  }
 0x92f   : > { %v1467_v33 = vsub.f32 %v4803_v26, %v1466_v32  ;;  %v3700_v32 = vld [vmem:[#allocation5 + $0xdc] ss:$12 sps:$4 sm:$0xff]  }
 0x931   : > { %v1468_v17 = vsel %vm847_vm3, %v1467_v33, 0.0  ;;  %v3701_v33 = vld [vmem:[#allocation5 + $0xe0] ss:$12 sps:$4 sm:$0xff]  }
 0x932   : > { %v1469_v34 = vmul.f32 %v1468_v17, %v1468_v17 }
 0x934   : > { %1470 = vadd.xlane.f32.xlu1 %v1469_v34  ;;  %v3702_v34 = vld [vmem:[#allocation5 + $0xf0] ss:$12 sps:$4 sm:$0xff]  }
 0x9c1   : > { %v1471_v42 = vpop.xlane.xlu1 %1470 }
 0x9c2   : > { %v1472_v43 = vmul.f32 0.03125, %v1471_v42  ;;  %v3706_v42 = vld [vmem:[#allocation5 + $0x108] ss:$12 sps:$4 sm:$0xff]  }
 0x9c4   : > { %v1473_v44 = vadd.f32 1e-05, %v1472_v43  ;;  %v3709_v43 = vld [vmem:[#allocation5 + $0x110] ss:$12 sps:$4 sm:$0xff]  }
 0x9c6   : > { %3768 = vrsqrt.f32 %v1473_v44  ;;  %v3712_v44 = vld [vmem:[#allocation5 + $0x124] ss:$12 sps:$4 sm:$0xff]  }
 0x9d0   : > { %v3769_v45 = vpop.eup %3768 }
 0x9d1   : > { %v1475_v47 = vmul.f32 %v3769_v45, %v1468_v17  ;;  %v3698_v17 = vld [vmem:[#allocation5 + $0xd8] ss:$12 sps:$4 sm:$0xff]   ;;  %v3710_v45 = vld [vmem:[#allocation5 + $0x120] ss:$12 sps:$4 sm:$0xff]  }
 0x9d3   : > { %v1482_v49 = vmul.f32 %v3005_v46, %v1475_v47  ;;  %v3713_v46 = vld [vmem:[#allocation5 + $0x128] ss:$12 sps:$4 sm:$0xff]  }
 0x9d4   : > { %v3716_v47 = vld [vmem:[#allocation5 + $0x13c] ss:$12 sps:$4 sm:$0xff]  }
 0x9d5   : > { %v1489_v50 = vadd.f32 %v3006_v48, %v1482_v49  ;;  %v3714_v48 = vld [vmem:[#allocation5 + $0x138] ss:$12 sps:$4 sm:$0xff]   ;;  %v3717_v49 = vld [vmem:[#allocation5 + $0x140] ss:$12 sps:$4 sm:$0xff]  }
 0x9d7   : > { %v1507_v51 = vpack.c.bf16 %v1489_v50, %v1489_v50  ;;  %v3720_v50 = vld [vmem:[#allocation5 + $0x154] ss:$12 sps:$4 sm:$0xff]  }
 0x9d9   : > { %3314 = vmatmul.mubr.bf16.vlgmr.msra.gmra.mrb[16].mxu1 %v1507_v51  ;;  %v3718_v51 = vld [vmem:[#allocation5 + $0x150] ss:$12 sps:$4 sm:$0xff]  }
 0x9da   : > { %1967 = vmatprep.mubr.bf16.mxu1 %v4201_v0  ;;  %v3693_v0 = vld [vmem:[#allocation13 + $0x38] sm:$0xff]   ;;  %1936 = vmatpush1.bf16.msra.mxu1 %v3694_v29 }
 0x9db   : > { %3332 = vmatpush3.bf16.msra.mxu0 %v3693_v0  ;;  %1937 = vmatprep.subr.bf16.mxu1 %v3700_v32 }
 0x9dc   : > { %3337 = vmatprep.subr.bf16.mxu0 %v4202_v1 }
 0x9de   : > { %1938 = vmatpush1.bf16.msra.mxu1 %v3698_v17 }
 0xaac   : > { %v1596_v59 = vpop.f32.mrb[16].mxu1 }
 0xaad   : > { %v1597_v60 = vadd.f32 %v3007_v58, %v1596_v59  ;;  %v3315_v63 = vpop.f32.mrb[17].mxu1  ;;  %v3027_v59 = vld [vmem:[%s5014_s3 + $0x1] ss:$0 sm:$0xff] }
 0xaae   : > { %v1599_v2 = vpop.f32.mrb[18].mxu1  ;;  %v3028_v63 = vld [vmem:[%s5015_s4 + $0x1] ss:$0 sm:$0xff] }
 0xaaf   : > { %v1603_v4 = vmul.f32 0.044715, %v1597_v60  ;;  %v3316_v5 = vpop.f32.mrb[19].mxu1  ;;  %v1602_v13 = vmul.f32 0.5, %v1597_v60 }
 0xab1   : > { %v1604_v6 = vmul.f32 %v1603_v4, %v1597_v60 }
 0xab3   : > { %v1605_v7 = vmul.f32 %v1604_v6, %v1597_v60  ;;  %v3029_v6 = vld [vmem:[%s5017_s6 + $0x3] sm:$0x7] }
 0xab5   : > { %v1606_v9 = vadd.f32 %v1605_v7, %v1597_v60  ;;  %v1799_v7 = vrot.slane %v3029_v6, %v919_v62 }
 0xab7   : > { %v1607_v10 = vmul.f32 0.7978846, %v1606_v9 }
 0xab9   : > { %3770 = vtanh.f32 %v1607_v10 }
 0xac3   : > { %v3771_v11 = vpop.eup %3770 }
 0xac4   : > { %v1609_v14 = vadd.f32 1.0, %v3771_v11 }
 0xac6   : > { %v1610_v15 = vmul.f32 %v1609_v14, %v1602_v13 }
 0xac8   : > { %v1628_v16 = vpack.c.bf16 %v1610_v15, %v1610_v15 }
 0xaca   : > { %3334 = vmatmul.mubr.bf16.vlgmr.msra.gmra.mrb[12].mxu0 %v1628_v16 }
 0xacb   : > { %3353 = vmatprep.mubr.msk.bf16.mxu0 %vm4203_vm0, %v4202_v1  ;;  %3338 = vmatpush3.bf16.msra.mxu0 %v3697_v31 }
 0xacc   : > { %3339 = vmatprep.subr.bf16.mxu0 %v4202_v1 }
 0xacf   : > { %3340 = vmatpush3.bf16.msra.mxu0 %v3701_v33 }
 0xad0   : > { %3341 = vmatprep.subr.bf16.mxu0 %v4202_v1 }
 0xad3   : > { %3342 = vmatpush3.bf16.msra.mxu0 %v3705_v40 }
 0xad4   : > { %3343 = vmatprep.subr.bf16.mxu0 %v4202_v1 }
 0xad7   : > { %3344 = vmatpush3.bf16.msra.mxu0 %v3709_v43 }
 0xad8   : > { %3345 = vmatprep.subr.bf16.mxu0 %v4202_v1 }
 0xadb   : > { %3346 = vmatpush3.bf16.msra.mxu0 %v3713_v46 }
 0xadc   : > { %3347 = vmatprep.subr.bf16.mxu0 %v4202_v1 }
 0xadf   : > { %3348 = vmatpush3.bf16.msra.mxu0 %v3717_v49 }
 0xae0   : > { %3349 = vmatprep.subr.bf16.mxu0 %v4202_v1 }
 0xae3   : > { %3350 = vmatpush3.bf16.msra.mxu0 %v3721_v52  ;;  %v3729_v52 = vld [vmem:[#allocation7 + $0x58] sm:$0xff]  }
 0xae4   : > { %3351 = vmatprep.subr.bf16.mxu0 %v4202_v1 }
 0xae7   : > { %3352 = vmatpush3.bf16.msra.mxu0 %v3725_v55  ;;  %v3732_v55 = vld [vmem:[#allocation7 + $0x70] sm:$0xff]  }
 0xae8   : > { %3381 = vmatprep.subr.bf16.mxu0 %v4202_v1 }
 0xb9d   : > { %v1717_v19 = vpop.f32.mrb[12].mxu0 }
 0xb9e   : > { %v1718_v20 = vadd.f32 %v3016_v18, %v1717_v19  ;;  %v3335_v22 = vpop.f32.mrb[13].mxu0  ;;  %v1795_v18 = vrot.slane %v3029_v6, %v915_v3 }
 0xb9f   : > { %v1720_v24 = vpop.f32.mrb[14].mxu0 }
 0xba0   : > { %v4833_v25 = vadd.f32 %v1718_v20, %v4803_v26  ;;  %v3336_v27 = vpop.f32.mrb[15].mxu0  ;;  %v3704_v26 = vld [vmem:[#allocation5 + $0xf4] ss:$12 sps:$4 sm:$0xff]   ;;  %v1803_v24 = vrot.slane %v3029_v6, %v923_v8 }
 0xba1   : > { %1939 = vmatprep.subr.bf16.mxu1 %v3704_v26 }
 0xba2   : > { %v1728_v28 = vsel %vm847_vm3, %v4833_v25, 0.0  ;;  %1940 = vmatpush1.bf16.msra.mxu1 %v3702_v34 }
 0xba3   : > { %1729 = vadd.xlane.f32.xlu1 %v1728_v28  ;;  %1941 = vmatprep.subr.bf16.mxu1 %v3708_v41 }
 0xba6   : > { %1942 = vmatpush1.bf16.msra.mxu1 %v3706_v42 }
 0xba7   : > { %1943 = vmatprep.subr.bf16.mxu1 %v3712_v44 }
 0xbaa   : > { %1944 = vmatpush1.bf16.msra.mxu1 %v3710_v45 }
 0xbab   : > { %1945 = vmatprep.subr.bf16.mxu1 %v3716_v47 }
 0xbae   : > { %1946 = vmatpush1.bf16.msra.mxu1 %v3714_v48 }
 0xbaf   : > { %1947 = vmatprep.subr.bf16.mxu1 %v3720_v50  ;;  %v3727_v50 = vld [vmem:[#allocation7 + $0x48] sm:$0xff]  }
 0xbb2   : > { %1948 = vmatpush1.bf16.msra.mxu1 %v3718_v51  ;;  %v3728_v51 = vld [vmem:[#allocation7 + $0x50] sm:$0xff]  }
 0xbb3   : > { %1949 = vmatprep.subr.bf16.mxu1 %v3724_v53  ;;  %v3730_v53 = vld [vmem:[#allocation7 + $0x60] sm:$0xff]  }
 0xbb6   : > { %1950 = vmatpush1.bf16.msra.mxu1 %v3722_v54  ;;  %v3731_v54 = vld [vmem:[#allocation7 + $0x68] sm:$0xff]  }
 0xbb7   : > { %3357 = vmatprep.subr.bf16.mxu1 %v4202_v1 }
 0xc30   : > { %v1730_v35 = vpop.xlane.xlu1 %1729 }
 0xc31   : > { %v1731_v36 = vmul.f32 0.03125, %v1730_v35 }
 0xc33   : > { %v1732_v37 = vsub.f32 %v4833_v25, %v1731_v36 }
 0xc35   : > { %v1733_v38 = vsel %vm847_vm3, %v1732_v37, 0.0 }
 0xc36   : > { %v1734_v39 = vmul.f32 %v1733_v38, %v1733_v38 }
 0xc38   : > { %1735 = vadd.xlane.f32.xlu1 %v1734_v39 }
 0xcc5   : > { %v1736_v56 = vpop.xlane.xlu1 %1735 }
 0xcc6   : > { %v1737_v57 = vmul.f32 0.03125, %v1736_v56 }
 0xcc8   : > { %v1738_v0 = vadd.f32 1e-05, %v1737_v57 }
 0xcca   : > { %3772 = vrsqrt.f32 %v1738_v0 }
 0xcd4   : > { %v3773_v58 = vpop.eup %3772 }
 0xcd5   : > { %v1740_v60 = vmul.f32 %v3773_v58, %v1733_v38 }
 0xcd7   : > { %v1747_v2 = vmul.f32 %v3027_v59, %v1740_v60 }
 0xcd9   : > { %v1754_v4 = vadd.f32 %v3028_v63, %v1747_v2 }
 0xcdb   : > { %v1790_v5 = vpack.c.bf16 %v1754_v4, %v1754_v4 }
 0xcdd   : > { %1968 = vmatmul.mubr.bf16.vlgmr.msra.gmra.mrb[20].mxu1 %v1790_v5  ;;  %3354 = vmatmul.mubr.bf16.vlgmr.msra.gmra.mrb[16].mxu0 %v1790_v5 }
 0xcde   : > { %3359 = vmatprep.mubr.msk.bf16.mxu1 %vm4203_vm0, %v4202_v1  ;;  %3397 = vmatprep.mubr.msk.bf16.mxu0 %vm4203_vm0, %v4202_v1 }
 0xcdf   : > { %3382 = vmatpush3.bf16.msra.mxu0 %v3726_v61  ;;  %v3749_v61 = vld [vmem:[#allocation13 + $0x78] sm:$0xff]  }
 0xce0   : > { %3383 = vmatprep.subr.bf16.mxu0 %v4202_v1 }
 0xce3   : > { %3384 = vmatpush3.bf16.msra.mxu0 %v3727_v50  ;;  %v3075_v50 = vld [vmem:[#allocation11 + $0x1] ss:$0 sm:$0xff] }
 0xce4   : > { %3385 = vmatprep.subr.bf16.mxu0 %v4202_v1 }
 0xce7   : > { %3386 = vmatpush3.bf16.msra.mxu0 %v3728_v51 }
 0xce8   : > { %3387 = vmatprep.subr.bf16.mxu0 %v4202_v1 }
 0xceb   : > { %3388 = vmatpush3.bf16.msra.mxu0 %v3729_v52 }
 0xcec   : > { %3389 = vmatprep.subr.bf16.mxu0 %v4202_v1 }
 0xcef   : > { %3390 = vmatpush3.bf16.msra.mxu0 %v3730_v53 }
 0xcf0   : > { %3391 = vmatprep.subr.bf16.mxu0 %v4202_v1 }
 0xcf3   : > { %3392 = vmatpush3.bf16.msra.mxu0 %v3731_v54 }
 0xcf4   : > { %3393 = vmatprep.subr.bf16.mxu0 %v4202_v1 }
 0xcf7   : > { %3394 = vmatpush3.bf16.msra.mxu0 %v3732_v55 }
 0xcf8   : > { %3395 = vmatprep.subr.bf16.mxu0 %v4202_v1 }
 0xdb0   : > { %v1969_v9 = vpop.f32.mrb[20].mxu1  ;;  %v2010_v10 = vpop.f32.mrb[16].mxu0 }
 0xdb1   : > { %v1971_v11 = vpop.f32.mrb[21].mxu1  ;;  %v3355_v13 = vpop.f32.mrb[17].mxu0  ;;  %v1970_v27 = vadd.f32 %v1969_v9, %v1795_v18  ;;  %v4870_v62 = vadd.f32 %v2010_v10, %v1803_v24 }
 0xdb2   : > { %v1972_v14 = vadd.f32 %v1971_v11, %v1799_v7  ;;  %v1973_v15 = vpop.f32.mrb[22].mxu1  ;;  %v2013_v16 = vpop.f32.mrb[18].mxu0  ;;  %v3733_v7 = vld [vmem:[#allocation7 + $0x78] sm:$0xff]  }
 0xdb3   : > { %v1974_v19 = vpop.f32.mrb[23].mxu1  ;;  %v3356_v20 = vpop.f32.mrb[19].mxu0  ;;  %v3055_v28 = vpack.c.bf16 %v1970_v27, %v1970_v27  ;;  %v2130_v3 = vsel %vm4742_vm7, %v4870_v62, 0.0  ;;  %v2072_v0 = vsel %vm844_vm5, %v4870_v62, 0.0  ;;  %3396 = vmatpush3.bf16.msra.mxu0 %v3733_v7  ;;  %v3063_v15 = vld [vmem:[%s5019_s8 + $0x1] ss:$0 sm:$0xff] }
 0xdb4   : > { %v2018_v22 = vpack.c.bf16 %v1972_v14, %v1972_v14  ;;  %v2132_v8 = vpack.c.bf16 %v2130_v3, %v2130_v3  ;;  %v2074_v59 = vpack.c.bf16 %v2072_v0, %v2072_v0  ;;  %3421 = vmatprep.subr.bf16.mxu0 %v4202_v1  ;;  %v3734_v62 = vld [vmem:[#allocation10 + $0x40] sm:$0xff]  }
 0xdb6   : > { %3358 = vmatpush3.bf16.xpose.msra.mxu1 %v2018_v22  ;;  %v2137_v21 = vsel %vm1258_vm9, %v2132_v8, 0  ;;  %v2183_v2 = vsel %vm1258_vm9, %v2074_v59, 0 }
 0xdb7   : > { %3363 = vmatprep.subr.bf16.mxu1 %v4202_v1 }
 0xdbd   : > { %3360 = vmatmul.mubr.msk.bf16.vlgmr.msra.gmra.mrb[24].mxu1 %vm4736_vm6, %v3055_v28 }
 0xdbe   : > { %3364 = vmatpush3.bf16.xpose.msra.mxu1 %v2018_v22  ;;  %3365 = vmatprep.mubr.msk.bf16.mxu1 %vm4203_vm0, %v4202_v1 }
 0xdbf   : > { %3369 = vmatprep.subr.bf16.mxu1 %v4202_v1 }
 0xdc5   : > { %3366 = vmatmul.mubr.msk.bf16.vlgmr.msra.gmra.mrb[28].mxu1 %vm2991_vm8, %v3055_v28  ;;  %v3735_v28 = vld [vmem:[#allocation10 + $0x48] sm:$0xff]  }
 0xdc6   : > { %3370 = vmatpush3.bf16.msra.mxu1 %v2137_v21  ;;  %3371 = vmatprep.mubr.msk.bf16.mxu1 %vm4203_vm0, %v4202_v1 }
 0xdc7   : > { %3375 = vmatprep.subr.bf16.mxu1 %v4202_v1 }
 0xe90   : > { %v2053_v29 = vpop.f32.mrb[24].mxu1 }
 0xe91   : > { %v2059_v30 = vmul.f32 0.25, %v2053_v29  ;;  %v3361_v31 = vpop.f32.mrb[25].mxu1 }
 0xe92   : > { %v2056_v32 = vpop.f32.mrb[26].mxu1  ;;  %v3737_v31 = vld [vmem:[#allocation10 + $0x58] sm:$0xff]  }
 0xe93   : > { %v3362_v33 = vpop.f32.mrb[27].mxu1  ;;  %v2060_v17 = vsel %vm842_vm10, %v2059_v30, -1e+30  ;;  %v3736_v30 = vld [vmem:[#allocation10 + $0x50] sm:$0xff]   ;;  %v3738_v32 = vld [vmem:[#allocation10 + $0x60] sm:$0xff]  }
 0xe94   : > { %v2061_v23 = vsel %vm1182_vm11, %v2060_v17, -inf  ;;  %v3739_v33 = vld [vmem:[#allocation10 + $0x68] sm:$0xff]  }
 0xe95   : > { %2062 = vmax.xlane.f32.xlu1 %v2061_v23  ;;  %v3741_v23 = vld [vmem:[#allocation10 + $0x78] sm:$0xff]  }
 0xe98   : > { %v2111_v26 = vpop.f32.mrb[28].mxu1 }
 0xe99   : > { %v2117_v34 = vmul.f32 0.25, %v2111_v26  ;;  %v3367_v35 = vpop.f32.mrb[29].mxu1  ;;  %v3742_v26 = vld [vmem:[#allocation13 + $0x40] sm:$0xff]  }
 0xe9a   : > { %v2114_v36 = vpop.f32.mrb[30].mxu1 }
 0xe9b   : > { %v3368_v37 = vpop.f32.mrb[31].mxu1  ;;  %v2118_v38 = vsel %vm842_vm10, %v2117_v34, -1e+30 }
 0xe9c   : > { %v2119_v39 = vsel %vm1182_vm11, %v2118_v38, -inf }
 0xe9d   : > { %2120 = vmax.xlane.f32.xlu0 %v2119_v39 }
 0xf22   : > { %v2063_v40 = vpop.xlane.xlu1 %2062 }
 0xf23   : > { %v2064_v41 = vsub.f32 %v2060_v17, %v2063_v40  ;;  %v3740_v17 = vld [vmem:[#allocation10 + $0x70] sm:$0xff]   ;;  %v3074_v40 = vld [vmem:[#allocation8 + $0x1] ss:$0 sm:$0xff] }
 0xf25   : > { %v2065_v42 = vmul.f32 1.442695, %v2064_v41 }
 0xf27   : > { %3774 = vpow2.f32 %v2065_v42 }
 0xf2a   : > { %v2121_v43 = vpop.xlane.xlu0 %2120 }
 0xf2b   : > { %v2122_v44 = vsub.f32 %v2118_v38, %v2121_v43  ;;  %v3073_v38 = vld [vmem:[%s5092_s1 + $0x1] ss:$0 sm:$0xff] }
 0xf2d   : > { %v2123_v45 = vmul.f32 1.442695, %v2122_v44  ;;  %v3743_v44 = vld [vmem:[#allocation13 + $0x48] sm:$0xff]  }
 0xf2f   : > { %3776 = vpow2.f32 %v2123_v45  ;;  %v3744_v45 = vld [vmem:[#allocation13 + $0x50] sm:$0xff]  }
 0xf31   : > { %v3775_v46 = vpop.eup %3774 }
 0xf32   : > { %v2067_v47 = vsel %vm1182_vm11, %v3775_v46, 0.0 }
 0xf33   : > { %2068 = vadd.xlane.f32.xlu1 %v2067_v47  ;;  %v3746_v47 = vld [vmem:[#allocation13 + $0x60] sm:$0xff]  }
 0xf39   : > { %v3777_v48 = vpop.eup %3776 }
 0xf3a   : > { %v2125_v49 = vsel %vm1182_vm11, %v3777_v48, 0.0 }
 0xf3b   : > { %2126 = vadd.xlane.f32.xlu0 %v2125_v49  ;;  %v3748_v49 = vld [vmem:[#allocation13 + $0x70] sm:$0xff]  }
 0xfc0   : > { %v2069_v57 = vpop.xlane.xlu1 %2068 }
 0xfc8   : > { %v2127_v56 = vpop.xlane.xlu0 %2126 }
 0xfc9   : > { %3778 = vrcp.f32 %v2127_v56 }
 0xfca   : > { %3780 = vrcp.f32 %v2069_v57 }
 0xfd3   : > { %v3779_v58 = vpop.eup %3778 }
 0xfd4   : > { %v2129_v60 = vmul.f32 %v3779_v58, %v3777_v48  ;;  %v3781_v4 = vpop.eup %3780  ;;  %v3747_v48 = vld [vmem:[#allocation13 + $0x68] sm:$0xff]  }
 0xfd5   : > { %v2071_v5 = vmul.f32 %v3781_v4, %v3775_v46  ;;  %v3745_v46 = vld [vmem:[#allocation13 + $0x58] sm:$0xff]  }
 0xfd6   : > { %v2131_v63 = vpack.c.bf16 %v2129_v60, %v2129_v60 }
 0xfd7   : > { %v2073_v6 = vpack.c.bf16 %v2071_v5, %v2071_v5 }
 0xfd8   : > { %3372 = vmatmul.mubr.msk.bf16.vlgmr.msra.gmra.mrb[32].mxu1 %vm1182_vm11, %v2131_v63 }
 0xfd9   : > { %3376 = vmatpush3.bf16.msra.mxu1 %v2183_v2  ;;  %3377 = vmatprep.mubr.msk.bf16.mxu1 %vm4203_vm0, %v4202_v1 }
 0xfda   : > { %3401 = vmatprep.subr.bf16.mxu1 %v4202_v1 }
 0xfe4   : > { %3378 = vmatmul.mubr.msk.bf16.vlgmr.msra.gmra.mrb[32].mxu1 %vm1182_vm11, %v2073_v6  ;;  %v3084_v6 = vld [vmem:[#allocation14 + $0x1] ss:$0 sm:$0xff] }
 0xfe5   : > { %3417 = vmatprep.mubr.msk.bf16.mxu1 %vm4203_vm0, %v4202_v1  ;;  %3402 = vmatpush3.bf16.msra.mxu1 %v3734_v62 }
 0xfe6   : > { %3403 = vmatprep.subr.bf16.mxu1 %v4202_v1 }
 0xfe9   : > { %3404 = vmatpush3.bf16.msra.mxu1 %v3735_v28  ;;  %v3753_v28 = vld [vmem:[#allocation19 + $0x18] sm:$0xff]  }
 0xfea   : > { %3405 = vmatprep.subr.bf16.mxu1 %v4202_v1 }
 0xfed   : > { %3406 = vmatpush3.bf16.msra.mxu1 %v3736_v30 }
 0xfee   : > { %3407 = vmatprep.subr.bf16.mxu1 %v4202_v1 }
 0xff1   : > { %3408 = vmatpush3.bf16.msra.mxu1 %v3737_v31 }
 0xff2   : > { %3409 = vmatprep.subr.bf16.mxu1 %v4202_v1 }
 0xff5   : > { %3410 = vmatpush3.bf16.msra.mxu1 %v3738_v32  ;;  %v3093_v32 = vld [vmem:[#allocation16] ss:$0 sm:$0xff] }
 0xff6   : > { %3411 = vmatprep.subr.bf16.mxu1 %v4202_v1 }
 0xff9   : > { %3412 = vmatpush3.bf16.msra.mxu1 %v3739_v33 }
 0xffa   : > { %3413 = vmatprep.subr.bf16.mxu1 %v4202_v1 }
 0xffd   : > { %3414 = vmatpush3.bf16.msra.mxu1 %v3740_v17  ;;  %v3094_v17 = vld [vmem:[#allocation17] ss:$0 sm:$0xff] }
 0xffe   : > { %3415 = vmatprep.subr.bf16.mxu1 %v4202_v1 }
0x1001   : > { %3416 = vmatpush3.bf16.msra.mxu1 %v3741_v23 }
0x1002   : > { %3441 = vmatprep.subr.bf16.mxu1 %v4202_v1 }
0x10b7   : > { %v2219_v9 = vpop.f32.mrb[32].mxu1 }
0x10b8   : > { %v2244_v10 = vpack.c.bf16 %v2219_v9, %v2219_v9  ;;  %v3379_v11 = vpop.f32.mrb[33].mxu1 }
0x10b9   : > { %v2222_v13 = vpop.f32.mrb[34].mxu1 }
0x10ba   : > { %v3380_v14 = vpop.f32.mrb[35].mxu1  ;;  %3398 = vmatmul.mubr.bf16.vlgmr.msra.gmra.mrb[20].mxu0 %v2244_v10 }
0x10bb   : > { %3437 = vmatprep.mubr.msk.bf16.mxu0 %vm4203_vm0, %v4202_v1  ;;  %3422 = vmatpush3.bf16.msra.mxu0 %v3742_v26 }
0x10bc   : > { %3423 = vmatprep.subr.bf16.mxu0 %v4202_v1 }
0x10bf   : > { %3424 = vmatpush3.bf16.msra.mxu0 %v3743_v44 }
0x10c0   : > { %3425 = vmatprep.subr.bf16.mxu0 %v4202_v1 }
0x10c3   : > { %3426 = vmatpush3.bf16.msra.mxu0 %v3744_v45 }
0x10c4   : > { %3427 = vmatprep.subr.bf16.mxu0 %v4202_v1 }
0x10c7   : > { %3428 = vmatpush3.bf16.msra.mxu0 %v3745_v46 }
0x10c8   : > { %3429 = vmatprep.subr.bf16.mxu0 %v4202_v1 }
0x10cb   : > { %3430 = vmatpush3.bf16.msra.mxu0 %v3746_v47 }
0x10cc   : > { %3431 = vmatprep.subr.bf16.mxu0 %v4202_v1 }
0x10cf   : > { %3432 = vmatpush3.bf16.msra.mxu0 %v3747_v48 }
0x10d0   : > { %3433 = vmatprep.subr.bf16.mxu0 %v4202_v1 }
0x10d3   : > { %3434 = vmatpush3.bf16.msra.mxu0 %v3748_v49 }
0x10d4   : > { %3435 = vmatprep.subr.bf16.mxu0 %v4202_v1 }
0x10d7   : > { %3436 = vmatpush3.bf16.msra.mxu0 %v3749_v61 }
0x118d   : > { %v2333_v16 = vpop.f32.mrb[20].mxu0 }
0x118e   : > { %v2334_v18 = vadd.f32 %v3063_v15, %v2333_v16  ;;  %v3399_v19 = vpop.f32.mrb[21].mxu0  ;;  %v3750_v16 = vld [vmem:[#allocation19] sm:$0xff]  }
0x118f   : > { %v2336_v20 = vpop.f32.mrb[22].mxu0 }
0x1190   : > { %v4924_v22 = vadd.f32 %v2334_v18, %v4833_v25  ;;  %v3400_v24 = vpop.f32.mrb[23].mxu0  ;;  %v3751_v18 = vld [vmem:[#allocation19 + $0x8] sm:$0xff]  }
0x1192   : > { %v2344_v27 = vsel %vm847_vm3, %v4924_v22, 0.0 }
0x1193   : > { %2345 = vadd.xlane.f32.xlu0 %v2344_v27 }
0x1220   : > { %v2346_v3 = vpop.xlane.xlu0 %2345 }
0x1221   : > { %v2347_v8 = vmul.f32 0.03125, %v2346_v3  ;;  %v3754_v3 = vld [vmem:[#allocation19 + $0x20] sm:$0xff]  }
0x1223   : > { %v2348_v21 = vsub.f32 %v4924_v22, %v2347_v8  ;;  %v3755_v8 = vld [vmem:[#allocation19 + $0x28] sm:$0xff]  }
0x1225   : > { %v2349_v25 = vsel %vm847_vm3, %v2348_v21, 0.0  ;;  %v3757_v21 = vld [vmem:[#allocation19 + $0x38] sm:$0xff]  }
0x1226   : > { %v2350_v29 = vmul.f32 %v2349_v25, %v2349_v25 }
0x1228   : > { %2351 = vadd.xlane.f32.xlu1 %v2350_v29 }
0x12b5   : > { %v2352_v34 = vpop.xlane.xlu1 %2351 }
0x12b6   : > { %v2353_v35 = vmul.f32 0.03125, %v2352_v34 }
0x12b8   : > { %v2354_v36 = vadd.f32 1e-05, %v2353_v35 }
0x12ba   : > { %3782 = vrsqrt.f32 %v2354_v36 }
0x12c4   : > { %v3783_v37 = vpop.eup %3782 }
0x12c5   : > { %v2356_v39 = vmul.f32 %v3783_v37, %v2349_v25 }
0x12c7   : > { %v2363_v41 = vmul.f32 %v3073_v38, %v2356_v39 }
0x12c9   : > { %v2370_v42 = vadd.f32 %v3074_v40, %v2363_v41 }
0x12cb   : > { %v2390_v43 = vpack.c.bf16 %v2370_v42, %v2370_v42 }
0x12cd   : > { %3418 = vmatmul.mubr.bf16.vlgmr.msra.gmra.mrb[36].mxu1 %v2390_v43 }
0x12ce   : > { %3457 = vmatprep.mubr.msk.bf16.mxu1 %vm4203_vm0, %v4202_v1  ;;  %3442 = vmatpush3.bf16.msra.mxu1 %v3750_v16 }
0x12cf   : > { %3443 = vmatprep.subr.bf16.mxu1 %v4202_v1 }
0x12d2   : > { %3444 = vmatpush3.bf16.msra.mxu1 %v3751_v18 }
0x12d3   : > { %3445 = vmatprep.subr.bf16.mxu1 %v4202_v1 }
0x13a0   : > { %v2479_v51 = vpop.f32.mrb[36].mxu1 }
0x13a1   : > { %v2480_v52 = vadd.f32 %v3075_v50, %v2479_v51  ;;  %v3419_v53 = vpop.f32.mrb[37].mxu1 }
0x13a2   : > { %v2482_v54 = vpop.f32.mrb[38].mxu1 }
0x13a3   : > { %v2486_v55 = vmul.f32 0.044715, %v2480_v52  ;;  %v3420_v56 = vpop.f32.mrb[39].mxu1  ;;  %v2485_v63 = vmul.f32 0.5, %v2480_v52 }
0x13a5   : > { %v2487_v57 = vmul.f32 %v2486_v55, %v2480_v52 }
0x13a7   : > { %v2488_v0 = vmul.f32 %v2487_v57, %v2480_v52 }
0x13a9   : > { %v2489_v58 = vadd.f32 %v2488_v0, %v2480_v52 }
0x13ab   : > { %v2490_v59 = vmul.f32 0.7978846, %v2489_v58 }
0x13ad   : > { %3784 = vtanh.f32 %v2490_v59 }
0x13b7   : > { %v3785_v60 = vpop.eup %3784 }
0x13b8   : > { %v2492_v2 = vadd.f32 1.0, %v3785_v60 }
0x13ba   : > { %v2493_v4 = vmul.f32 %v2492_v2, %v2485_v63 }
0x13bc   : > { %v2513_v5 = vpack.c.bf16 %v2493_v4, %v2493_v4 }
0x13be   : > { %3438 = vmatmul.mubr.bf16.vlgmr.msra.gmra.mrb[24].mxu0 %v2513_v5 }
0x1491   : > { %v2602_v7 = vpop.f32.mrb[24].mxu0 }
0x1492   : > { %v2603_v9 = vadd.f32 %v3084_v6, %v2602_v7  ;;  %v3439_v10 = vpop.f32.mrb[25].mxu0 }
0x1493   : > { %v2605_v11 = vpop.f32.mrb[26].mxu0 }
0x1494   : > { %v3440_v13 = vpop.f32.mrb[27].mxu0  ;;  %v2608_v14 = vadd.f32 %v2603_v9, %v4924_v22  ;;  %v3752_v22 = vld [vmem:[#allocation19 + $0x10] sm:$0xff]  }
0x1495   : > { %3446 = vmatpush3.bf16.msra.mxu1 %v3752_v22 }
0x1496   : > { %v2611_v15 = vsel %vm847_vm3, %v2608_v14, 0.0  ;;  %3447 = vmatprep.subr.bf16.mxu1 %v4202_v1 }
0x1497   : > { %2612 = vadd.xlane.f32.xlu0 %v2611_v15 }
0x1499   : > { %3448 = vmatpush3.bf16.msra.mxu1 %v3753_v28 }
0x149a   : > { %3449 = vmatprep.subr.bf16.mxu1 %v4202_v1 }
0x149d   : > { %3450 = vmatpush3.bf16.msra.mxu1 %v3754_v3 }
0x149e   : > { %3451 = vmatprep.subr.bf16.mxu1 %v4202_v1 }
0x14a1   : > { %3452 = vmatpush3.bf16.msra.mxu1 %v3755_v8 }
0x14a2   : > { %3453 = vmatprep.subr.bf16.mxu1 %v4202_v1 }
0x14a5   : > { %3454 = vmatpush3.bf16.msra.mxu1 %v3756_v12 }
0x14a6   : > { %3455 = vmatprep.subr.bf16.mxu1 %v4202_v1 }
0x14a9   : > { %3456 = vmatpush3.bf16.msra.mxu1 %v3757_v21 }
0x1524   : > { %v2613_v19 = vpop.xlane.xlu0 %2612 }
0x1525   : > { %v2614_v20 = vmul.f32 0.03125, %v2613_v19 }
0x1527   : > { %v2615_v24 = vsub.f32 %v2608_v14, %v2614_v20 }
0x1529   : > { %v2616_v27 = vsel %vm847_vm3, %v2615_v24, 0.0 }
0x152a   : > { %v2617_v62 = vmul.f32 %v2616_v27, %v2616_v27 }
0x152c   : > { %2618 = vadd.xlane.f32.xlu1 %v2617_v62 }
0x15b9   : > { %v2619_v25 = vpop.xlane.xlu1 %2618 }
0x15ba   : > { %v2620_v29 = vmul.f32 0.03125, %v2619_v25 }
0x15bc   : > { %v2621_v30 = vadd.f32 1e-05, %v2620_v29 }
0x15be   : > { %3786 = vrsqrt.f32 %v2621_v30 }
0x15c8   : > { %v3787_v31 = vpop.eup %3786 }
0x15c9   : > { %v2623_v33 = vmul.f32 %v3787_v31, %v2616_v27 }
0x15cb   : > { %v2630_v23 = vmul.f32 %v3093_v32, %v2623_v33 }
0x15cd   : > { %v2637_v26 = vadd.f32 %v3094_v17, %v2630_v23 }
0x15cf   : > { %v2638_v34 = vpack.c.bf16 %v2637_v26, %v2637_v26 }
0x15d1   : > { %3458 = vmatmul.mubr.bf16.vlgmr.msra.gmra.mrb[40].mxu1 %v2638_v34 }
0x16a4   : > { %v2737_v1 = vpop.f32.mrb[40].mxu1 }
0x16a5   : > { %2743 = vst [vmem:[%s720_s21] sm:$0xff] %v2737_v1  ;;  %v3459_v35 = vpop.f32.mrb[41].mxu1 }
0x16a6   : > { %v2740_v36 = vpop.f32.mrb[42].mxu1 }
0x16a7   : > { %4109 = shalt.err (!%p4106_p3)
}
0x16a8   : > { %s4110_s22 = scalar_lea.hbm %s4971_s19, 128  ;;  %s4114_s29 = scalar_lea.hbm %s5096_s24, 256 }
0x16a9   : > { %p4111_p4 = scmp.ne.s32.totalorder %s4971_s19, %s4110_s22  ;;  %p4115_p11 = scmp.lt.u32.totalorder %s4971_s19, %s5096_s24 }
0x16aa   : > { %p4116_p13 = scmp.lt.u32.totalorder %s4114_s29, %s4110_s22  ;;  %p4118_p6 = scmp.lt.u32.totalorder %s4110_s22, %s4971_s19 }
0x16ab   : > { %p4112_p7 = pnand %p4111_p4, %p5097_p0 }
0x16ac   : > { %p4117_p5 = por %p4116_p13, %p4115_p11 }
0x16ad   : > { %p4113_p8 = pneg %p4112_p7 }
0x16ae   : > { %p4119_p9 = por %p4118_p6, %p4117_p5 }
0x16b0   : > { %p4120_p10 = pnand %p4119_p9, %p4113_p8 }
0x16b2   : > { %4123 = shalt.err (!%p4120_p10)
}
0x16b3   : > { %3513 = dma.vmem_to_hbm [thread:$0]  (%p5097_p0), %s4966_s2, 128, %s4971_s19, %s2745_s25   ;;  %v3460_v37 = vpop.f32.mrb[43].mxu1 }
0x16b4 PF: > { %s5098_s5 = sld [smem:[#allocation31_spill]]  ;;  %s5099_s10 = sld [smem:[#allocation28_spill]] }
0x16b5   : > { %s5100_s28 = sld [smem:[#allocation35_spill]] }
0x16ba   : > { %p3575_p1 = scmp.ge.s32.totalorder %s5098_s5, 2  ;;  %s2770_s30 = sand.u32 1, %s5099_s10  }
0x16bb   : > { %p5101_p2 = scmp.ne.s32.totalorder %s5100_s28, 0  ;;  %s2771_s0 = scalar_lea.sflag [#allocation4], %s2770_s30 }
0x16bd   : > { %p3550_p12 = pnand %p3575_p1, %p5101_p2 }
0x16bf   : > { %4165 = dma.done.wait (!%p3550_p12), %s2771_s0, 128  }
0x16c0   : > { %4167 = vsyncadd (!%p3550_p12), %s2771_s0, 4294967168  ;;  %s5102_s30 = sld [smem:[#allocation32_spill]]  ;;  %s5103_s27 = sld [smem:[#allocation29_spill]] }
0x16c1   : > { %s5104_s28 = sld [smem:[#allocation30_spill]]  ;;  %s5105_s29 = sld [smem:[#allocation33_spill]] }
0x16c6   : > { %p34_p3 = scmp.ge.s32.totalorder %s5102_s30, 4  }
0x16c8   :  { %36 = sbr.rel (!%p34_p3) target bundleno = 19 (0x13), region = 184 }
0x16cf   :  { %2776 = vsyncpa [#allocation3], 1 }
0x16d0   :  { %2778 = vsyncpa [#allocation3 + $0x1], 1 }
0x16d1   :  { %2779 = vsyncpa [#allocation6], 1 }
0x16d2   :  { %2780 = vsyncpa [#allocation9], 1 }
0x16d3   :  { %2781 = vsyncpa [#allocation12], 1 }
0x16d4   :  { %2782 = vsyncpa [#allocation15], 1 }
0x16d5   :  { %2783 = vsyncpa [#allocation18], 1 }
0x16d6   :  { %2784 = vsyncpa [#allocation4], 1 }
0x16d7   :  { %2786 = vsyncpa [#allocation4 + $0x1], 1 }

</bundles_post_ra>
